<compile_context>
chip_gen: v7x
topology: tpu7x:2x2x1
jax: 0.10.0
libtpu: 0.0.40
codegen_flags: <defaults>
</compile_context>

<pallas_src>
import functools

import jax
import jax.numpy as jnp
from jax.experimental import pallas as pl
from jax.experimental.pallas import tpu as pltpu


def _softsupcon_kernel(*refs, inv_temperature, bsz, tile_rows, neg_mode, has_tail):
    """One (tile_rows, bsz) row tile of SoftSupConLoss per grid step."""
    if neg_mode in ("stream_binary", "stream_float"):
        sims_ref, mask_ref, neg_ref, out_ref = refs
    else:
        sims_ref, mask_ref, out_ref = refs
        neg_ref = None

    sims = sims_ref[...].astype(jnp.float32) * inv_temperature      # [TM, bsz]
    mask = mask_ref[...].astype(jnp.float32)                         # [TM, bsz]

    need_row_ids = has_tail or (neg_mode == "no_self")
    if need_row_ids:
        row = (pl.program_id(0) * tile_rows
               + jax.lax.broadcasted_iota(jnp.int32, (tile_rows, 1), 0))  # [TM,1]

    if has_tail:
        # Rows beyond bsz in the last (partial) tile hold unspecified VMEM;
        # zero them so no inf/NaN is ever produced (they are discarded on the
        # masked output writeback anyway).
        row_valid = row < bsz                                        # [TM, 1]
        sims = jnp.where(row_valid, sims, 0.0)
        mask = jnp.where(row_valid, mask, 0.0)

    logits_max = jnp.max(sims, axis=1, keepdims=True)                # [TM, 1]
    logits = sims - logits_max                                       # detach() is a fwd no-op
    exp_logits = jnp.exp(logits)                                     # [TM, bsz]

    if neg_mode == "stream_binary":
        # Binary mask: select instead of int->f32 convert + multiply.
        exp_logits = jnp.where(neg_ref[...] != 0, exp_logits, 0.0)
    elif neg_mode == "stream_float":
        neg = neg_ref[...].astype(jnp.float32)
        if has_tail:
            neg = jnp.where(row_valid, neg, 1.0)   # keep tail rows finite
        exp_logits = exp_logits * neg
    elif neg_mode == "no_self":
        # Structural neg_mask = 1 - I handled in-kernel: exclude the diagonal
        # without streaming a bsz x bsz matrix from HBM.
        col = jax.lax.broadcasted_iota(jnp.int32, exp_logits.shape, 1)
        exp_logits = jnp.where(col == row, 0.0, exp_logits)
    # neg_mode == "none": plain row sum (neg_mask of all ones).

    denom = jnp.sum(exp_logits, axis=1, keepdims=True) + 1e-12       # [TM, 1]
    mask_sum = jnp.sum(mask, axis=1, keepdims=True)                  # [TM, 1]
    # log_prob eliminated: sum(mask*(logits - log d)) = sum(mask*logits) - mask_sum*log d
    pos_sum = (jnp.sum(mask * logits, axis=1, keepdims=True)
               - mask_sum * jnp.log(denom))                          # [TM, 1]
    out_ref[...] = -(pos_sum / (mask_sum + 1e-6))


def _vmem_budget_bytes():
    """~75% of physical VMEM (96 MiB v5e/v6e, 48 MiB v7x); 48 MiB fallback."""
    try:
        info = pltpu.get_tpu_info()
        cap = getattr(info, "vmem_capacity_bytes", None)
        if cap:
            return int(cap) * 3 // 4
    except Exception:
        pass
    return 48 * 1024 * 1024


def _pick_tile_rows(bsz, input_bytes_per_elem, requested, vmem_budget):
    """Largest row tile whose full footprint fits the budget.

    Footprint per tile row = 2x double-buffered input bytes + ~4 live
    [TM, bsz] f32 temporaries (upcast sims/mask, exp_logits, logits).
    """
    bytes_per_row = bsz * (2 * input_bytes_per_elem + 4 * 4)
    max_rows = max(32, int(vmem_budget // max(1, bytes_per_row)))
    if requested is not None:
        tm = max(1, min(int(requested), bsz))
    else:
        tm = min(bsz, 512, max_rows)
        if bsz >= 256:
            # Keep >= 2 grid steps so a megacore (v7x) can split the work.
            tm = min(tm, pl.cdiv(bsz, 2))
    if tm < bsz:
        # Multiple of 32 satisfies sublane tiling for f32 / bf16 / int8 blocks.
        tm = max(32, (tm // 32) * 32)
    return min(tm, bsz)


def soft_sup_con_loss(sims, mask, neg_mask=None, *, temperature=0.07,
                      reduction='mean', tile_rows=None,
                      cast_sims_to_bf16=False, vmem_budget_bytes=None):
    """Pallas implementation of SoftSupConLoss.forward.

    sims: [bsz, bsz] similarities. mask: [bsz, bsz] (soft or binary).
    neg_mask: None (all ones), a [bsz, bsz] array (int/bool -> select path,
    float -> multiply path), or the string "no_self" for the structural
    1 - I mask handled in-kernel with no HBM stream.
    """
    sims = jnp.asarray(sims)
    mask = jnp.asarray(mask)
    bsz = sims.shape[0]
    assert sims.shape == (bsz, bsz)
    assert mask.shape == (bsz, bsz)

    if cast_sims_to_bf16 and sims.dtype == jnp.float32:
        # Halves the dominant HBM stream; compute stays f32 in-kernel. Results
        # then match the f32 reference only to ~bf16 precision.
        sims = sims.astype(jnp.bfloat16)

    if isinstance(neg_mask, str):
        assert neg_mask == "no_self"
        neg_mode = "no_self"
        inputs = (sims, mask)
    elif neg_mask is None:
        neg_mode = "none"
        inputs = (sims, mask)
    else:
        neg_mask = jnp.asarray(neg_mask)
        assert neg_mask.shape == (bsz, bsz)
        if (jnp.issubdtype(neg_mask.dtype, jnp.integer)
                or jnp.issubdtype(neg_mask.dtype, jnp.bool_)):
            neg_mode = "stream_binary"
        else:
            neg_mode = "stream_float"
        inputs = (sims, mask, neg_mask)

    if vmem_budget_bytes is None:
        vmem_budget_bytes = _vmem_budget_bytes()
    bytes_per_elem = sum(x.dtype.itemsize for x in inputs)
    tm = _pick_tile_rows(bsz, bytes_per_elem, tile_rows, vmem_budget_bytes)
    num_tiles = pl.cdiv(bsz, tm)
    has_tail = (bsz % tm) != 0

    kernel = functools.partial(
        _softsupcon_kernel,
        inv_temperature=float(1.0 / temperature),
        bsz=bsz, tile_rows=tm, neg_mode=neg_mode, has_tail=has_tail)

    in_specs = [pl.BlockSpec((tm, bsz), lambda i: (i, 0)) for _ in inputs]

    loss_col = pl.pallas_call(
        kernel,
        out_shape=jax.ShapeDtypeStruct((bsz, 1), jnp.float32),
        grid_spec=pltpu.PrefetchScalarGridSpec(
            num_scalar_prefetch=0,
            grid=(num_tiles,),
            in_specs=in_specs,
            out_specs=pl.BlockSpec((tm, 1), lambda i: (i, 0)),
        ),
        compiler_params=pltpu.CompilerParams(
            dimension_semantics=("parallel",),
            vmem_limit_bytes=int(vmem_budget_bytes)),
    )(*inputs)

    loss_vec = loss_col[:, 0]
    if reduction == 'mean':
        # Tiny O(bsz) reduction done in XLA; keeps the grid axis data-parallel.
        return jnp.mean(loss_vec)
    return loss_vec


def _reference(sims, mask, neg_mask=None, temperature=0.07, reduction='mean'):
    sims = sims / temperature
    logits = sims - jnp.max(sims, axis=1, keepdims=True)
    if neg_mask is None:
        neg_mask = jnp.ones_like(mask)
    exp_logits = jnp.exp(logits) * neg_mask
    log_prob = logits - jnp.log(jnp.sum(exp_logits, axis=1, keepdims=True) + 1e-12)
    mean_log_prob_pos = jnp.sum(mask * log_prob, axis=1) / (jnp.sum(mask, axis=1) + 1e-6)
    loss = -mean_log_prob_pos
    if reduction == 'mean':
        loss = loss.mean()
    return loss


if __name__ == "__main__":
    key = jax.random.PRNGKey(0)
    k_sims, k_lbl, k_sims2, k_lbl2 = jax.random.split(key, 4)

    # ---- Case A: bsz=256, 2-tile pipelined grid, binary int8 neg_mask ------
    bsz = 256
    sims = jax.random.uniform(k_sims, (bsz, bsz), jnp.float32,
                              minval=-1.0, maxval=1.0)
    labels = jax.random.randint(k_lbl, (bsz,), 0, 10)
    mask = (labels[:, None] == labels[None, :]).astype(jnp.float32)
    neg = 1.0 - jnp.eye(bsz, dtype=jnp.float32)

    loss = soft_sup_con_loss(sims, mask, neg.astype(jnp.int8),
                             temperature=0.07, reduction='mean')
    jax.block_until_ready(loss)
    ref = _reference(sims, mask, neg, 0.07, 'mean')
    assert jnp.allclose(loss, ref, rtol=1e-4, atol=1e-4), (loss, ref)

    # ---- Case B: structural neg_mask = 1 - I handled in-kernel (no stream) -
    loss_ns = soft_sup_con_loss(sims, mask, "no_self",
                                temperature=0.07, reduction='none')
    jax.block_until_ready(loss_ns)
    ref_ns = _reference(sims, mask, neg, 0.07, 'none')
    assert jnp.allclose(loss_ns, ref_ns, rtol=1e-4, atol=1e-4)

    # ---- Case C: neg_mask=None (SimCLR-style denominator), per-row output --
    loss_vec = soft_sup_con_loss(sims, mask, None,
                                 temperature=0.07, reduction='none')
    jax.block_until_ready(loss_vec)
    ref_vec = _reference(sims, mask, None, 0.07, 'none')
    assert jnp.allclose(loss_vec, ref_vec, rtol=1e-4, atol=1e-4)

    # ---- Case D: non-divisible bsz (tail masking) + soft float masks -------
    bsz2 = 200
    sims2 = jax.random.uniform(k_sims2, (bsz2, bsz2), jnp.float32,
                               minval=-1.0, maxval=1.0)
    labels2 = jax.random.randint(k_lbl2, (bsz2,), 0, 7)
    soft_mask2 = (labels2[:, None] == labels2[None, :]).astype(jnp.float32) * 0.8 + 0.1
    neg2 = 1.0 - jnp.eye(bsz2, dtype=jnp.float32)
    loss2 = soft_sup_con_loss(sims2, soft_mask2, neg2, temperature=0.1,
                              reduction='mean', tile_rows=128)
    jax.block_until_ready(loss2)
    ref2 = _reference(sims2, soft_mask2, neg2, 0.1, 'mean')
    assert jnp.allclose(loss2, ref2, rtol=1e-4, atol=1e-4), (loss2, ref2)

    # ---- Case E: bf16 sims bandwidth option (looser tolerance by design) ---
    loss_bf16 = soft_sup_con_loss(sims, mask, neg.astype(jnp.int8),
                                  temperature=0.07, reduction='mean',
                                  cast_sims_to_bf16=True)
    jax.block_until_ready(loss_bf16)
    assert jnp.allclose(loss_bf16, ref, rtol=5e-2, atol=5e-2), (loss_bf16, ref)

    print("KERNEL_OK")
</pallas_src>

<mosaic_0001>
module attributes {stable_mosaic.version = 11 : i64} {
  func.func @_softsupcon_kernel(%arg0: i32, %arg1: memref<128x256xf32, #tpu.memory_space<vmem>>, %arg2: memref<128x256xf32, #tpu.memory_space<vmem>>, %arg3: memref<128x256xi8, #tpu.memory_space<vmem>>, %arg4: memref<128x1xf32, #tpu.memory_space<vmem>>) attributes {dimension_semantics = [#tpu.dimension_semantics<parallel>], iteration_bounds = array<i64: 2>, scalar_prefetch = 0 : i64, scratch_operands = 0 : i64, tpu.core_type = #tpu.core_type<tc>, window_params = [{transform_indices = @transform_0, window_bounds = array<i64: 128, 256>}, {transform_indices = @transform_1, window_bounds = array<i64: 128, 256>}, {transform_indices = @transform_2, window_bounds = array<i64: 128, 256>}, {transform_indices = @transform_3, window_bounds = array<i64: 128, 1>}]} {
    %c0 = arith.constant 0 : index
    %c0_0 = arith.constant 0 : index
    %0 = vector.load %arg1[%c0, %c0_0] : memref<128x256xf32, #tpu.memory_space<vmem>>, vector<128x256xf32>
    %cst = arith.constant 14.2857141 : f32
    %1 = vector.broadcast %cst : f32 to vector<128x256xf32>
    %2 = arith.mulf %0, %1 : vector<128x256xf32>
    %c0_1 = arith.constant 0 : index
    %c0_2 = arith.constant 0 : index
    %3 = vector.load %arg2[%c0_1, %c0_2] : memref<128x256xf32, #tpu.memory_space<vmem>>, vector<128x256xf32>
    %cst_3 = arith.constant dense<0xFF800000> : vector<128xf32>
    %4 = vector.multi_reduction <maximumf>, %2, %cst_3 [1] : vector<128x256xf32> to vector<128xf32>
    %5 = vector.shape_cast %4 : vector<128xf32> to vector<128x1xf32>
    %6 = vector.broadcast %5 : vector<128x1xf32> to vector<128x256xf32>
    %7 = arith.subf %2, %6 : vector<128x256xf32>
    %8 = math.exp %7 : vector<128x256xf32>
    %c0_4 = arith.constant 0 : index
    %c0_5 = arith.constant 0 : index
    %9 = vector.load %arg3[%c0_4, %c0_5] : memref<128x256xi8, #tpu.memory_space<vmem>>, vector<128x256xi8>
    %c0_i8 = arith.constant 0 : i8
    %10 = vector.broadcast %c0_i8 : i8 to vector<128x256xi8>
    %11 = arith.cmpi ne, %9, %10 : vector<128x256xi8>
    %cst_6 = arith.constant 0.000000e+00 : f32
    %12 = vector.broadcast %cst_6 : f32 to vector<128x256xf32>
    %13 = arith.select %11, %8, %12 : vector<128x256xi1>, vector<128x256xf32>
    %cst_7 = arith.constant dense<0.000000e+00> : vector<128xf32>
    %14 = vector.multi_reduction <add>, %13, %cst_7 [1] : vector<128x256xf32> to vector<128xf32>
    %15 = vector.shape_cast %14 : vector<128xf32> to vector<128x1xf32>
    %cst_8 = arith.constant 9.99999996E-13 : f32
    %16 = vector.broadcast %cst_8 : f32 to vector<128x1xf32>
    %17 = arith.addf %15, %16 : vector<128x1xf32>
    %cst_9 = arith.constant dense<0.000000e+00> : vector<128xf32>
    %18 = vector.multi_reduction <add>, %3, %cst_9 [1] : vector<128x256xf32> to vector<128xf32>
    %19 = vector.shape_cast %18 : vector<128xf32> to vector<128x1xf32>
    %20 = arith.mulf %3, %7 : vector<128x256xf32>
    %cst_10 = arith.constant dense<0.000000e+00> : vector<128xf32>
    %21 = vector.multi_reduction <add>, %20, %cst_10 [1] : vector<128x256xf32> to vector<128xf32>
    %22 = vector.shape_cast %21 : vector<128xf32> to vector<128x1xf32>
    %23 = math.log %17 : vector<128x1xf32>
    %24 = arith.mulf %19, %23 : vector<128x1xf32>
    %25 = arith.subf %22, %24 : vector<128x1xf32>
    %cst_11 = arith.constant 9.99999997E-7 : f32
    %26 = vector.broadcast %cst_11 : f32 to vector<128x1xf32>
    %27 = arith.addf %19, %26 : vector<128x1xf32>
    %28 = arith.divf %25, %27 : vector<128x1xf32>
    %cst_12 = arith.constant 0.000000e+00 : f32
    %29 = vector.broadcast %cst_12 : f32 to vector<128x1xf32>
    %30 = arith.subf %29, %28 : vector<128x1xf32>
    %c0_13 = arith.constant 0 : index
    %c0_14 = arith.constant 0 : index
    %31 = vector.load %arg4[%c0_13, %c0_14] : memref<128x1xf32, #tpu.memory_space<vmem>>, vector<128x1xf32>
    tpu.vector_store %arg4[%c0_13, %c0_14], %30 {strides = array<i32>} : memref<128x1xf32, #tpu.memory_space<vmem>>, vector<128x1xf32>,
    return
  }
  func.func @transform_0(%arg0: i32) -> (i32, i32) {
    %c0_i32 = arith.constant 0 : i32
    %c0_i32_0 = arith.constant 0 : i32
    return %arg0, %c0_i32 : i32, i32
  }
  func.func @transform_1(%arg0: i32) -> (i32, i32) {
    %c0_i32 = arith.constant 0 : i32
    %c0_i32_0 = arith.constant 0 : i32
    return %arg0, %c0_i32 : i32, i32
  }
  func.func @transform_2(%arg0: i32) -> (i32, i32) {
    %c0_i32 = arith.constant 0 : i32
    %c0_i32_0 = arith.constant 0 : i32
    return %arg0, %c0_i32 : i32, i32
  }
  func.func @transform_3(%arg0: i32) -> (i32, i32) {
    %c0_i32 = arith.constant 0 : i32
    %c0_i32_0 = arith.constant 0 : i32
    return %arg0, %c0_i32 : i32, i32
  }
}

</mosaic_0001>

<bundles_post_ra>
// kernel: tpu_custom_call.1
= control target key start
LH: loop header
LB: loop body
LE: loop exit
PB: predicated region body
PF: predicated region fallthrough
CT: control target
= control target key end

     0   :  { %8 = vsyncpa [#allocation3], 0  ;;  %s2647_s0 = inlined_call_operand.hbm [shape: f32[256,256], index: 0, kind: input, shape index: {}]   ;;  %s2648_s1 = inlined_call_operand.hbm [shape: f32[256,256], index: 1, kind: input, shape index: {}]   ;;  %s2649_s2 = inlined_call_operand.hbm [shape: s8[256,256], index: 2, kind: input, shape index: {}]   ;;  %s2650_s3 = inlined_call_operand.vmem [shape: f32[256,1], index: 3, kind: output, shape index: {}]  }
   0x1   :  { %10 = vsyncpa [#allocation3 + $0x1], 0 }
   0x2   :  { %11 = vsyncpa [#allocation5], 0 }
   0x3   :  { %13 = vsyncpa [#allocation5 + $0x1], 0  ;;  %s1546_s12 = smov 0   ;;  %s1548_s13 = smov 0  }
   0x4   :  { %s1550_s14 = smov 0   ;;  %s1552_s15 = smov 0  }
   0x5 LB: > { %s1565_s16 = sadd.s32 4294967295, %s1518_s15   ;;  %s1568_s17 = sadd.s32 1, %s1518_s15   ;;  %s1518_s15 = sphi %s1552_s15, %s2862_s15   ;;  %s1514_s14 = sphi %s1550_s14, %s2861_s14   ;;  %s1510_s13 = sphi %s1548_s13, %s2860_s13   ;;  %s1506_s12 = sphi %s1546_s12, %s2859_s12  }
   0x6   : > { %s23_s18 = ssub.s32 %s1518_s15, %s1568_s17  ;;  %s26_s19 = sadd.s32 1, %s1514_s14 }
   0x7   : > { %p24_p0 = scmp.eq.s32.totalorder %s23_s18, 0  ;;  %p33_p1 = scmp.ne.s32.totalorder %s1514_s14, %s1510_s13 }
   0x8   : > { %p34_p2 = scmp.eq.s32.totalorder %s1518_s15, 0  ;;  %p39_p3 = scmp.ne.s32.totalorder %s1510_s13, %s1506_s12 }
   0x9   : > { %s1578_s20 = scalar_select %p24_p0, %s1514_s14, %s26_s19  }
   0xa   : > { %p35_p4 = por %p34_p2, %p33_p1  ;;  %p40_p5 = scmp.eq.s32.totalorder %s1565_s16, 0 }
   0xb   : > { %p1226_p6 = scmp.lt.s32.totalorder %s1518_s15, 2  ;;  %s1587_s22 = sand.u32 1, %s1514_s14  }
   0xc   : > { %p1582_p7 = por %p40_p5, %p39_p3  ;;  %s1184_s23 = sshll.u32 %s1587_s22, 8 }
   0xd   : > { %s1205_s24 = sshll.u32 %s1518_s15, 12  ;;  %p1591_p8 = pnand %p1226_p6, %p35_p4 }
   0xe   : > { %s2688_s21 = scalar_select %p1582_p7, 1, 0 }
   0xf   : > { %s163_s26 = sand.u32 1, %s1518_s15   ;;  %s1601_s29 = scalar_lea.hbm %s2648_s1, %s1205_s24 }
  0x10   : > { %s167_s30 = scalar_lea.vmem [#allocation4], %s1184_s23  ;;  %s1609_s5 = scalar_lea.sflag [#allocation5], %s163_s26 }
  0x11   : > { %s175_s4 = sshll.u32 %s167_s30, 4  ;;  %s1390_s6 = scalar_lea.hbm %s1601_s29, 4096  ;;  %s1606_s4 = int_to_ptr.vmem [resolvable:$true] %s175_s4 }
  0x12   : > { %p1391_p11 = scmp.ne.s32.totalorder %s1601_s29, %s1390_s6  ;;  %p1615_p12 = pneg %p1591_p8 }
  0x13   : > { %s1395_s10 = scalar_lea.hbm %s2648_s1, 8192  ;;  %p1396_p1 = scmp.lt.u32.totalorder %s1601_s29, %s2648_s1 }
  0x14   : > { %p1393_p13 = pnand %p1615_p12, %p1391_p11  ;;  %p1397_p2 = scmp.lt.u32.totalorder %s1395_s10, %s1390_s6 }
  0x15   : > { %p1399_p4 = scmp.lt.u32.totalorder %s1390_s6, %s1601_s29 }
  0x16   : > { %p1394_p0 = pneg %p1393_p13  ;;  %p1398_p3 = por %p1397_p2, %p1396_p1 }
  0x18   : > { %p1400_p5 = por %p1399_p4, %p1398_p3 }
  0x1a   : > { %p1401_p6 = pnand %p1400_p5, %p1394_p0 }
  0x1c   : > { %1404 = shalt.err (!%p1401_p6)
}
  0x1d   : > { %s1405_s18 = scalar_lea.vmem %s1606_s4, 4096  ;;  %s1520_s19 = smov [#allocation4]  }
  0x1e   : > { %p1406_p11 = scmp.ne.s32.totalorder %s1606_s4, %s1405_s18  ;;  %s1410_s26 = sshll.u32 %s1520_s19, 4  ;;  %s1411_s26 = int_to_ptr.vmem [resolvable:$false] %s1410_s26 }
  0x1f   : > { %s1412_s27 = scalar_lea.vmem %s1411_s26, 8192  ;;  %p1413_p10 = scmp.lt.s32.totalorder %s1606_s4, %s1411_s26 }
  0x20   : > { %p1408_p13 = pnand %p1406_p11, %p1615_p12  ;;  %p1414_p7 = scmp.lt.s32.totalorder %s1412_s27, %s1405_s18 }
  0x22   : > { %p1409_p9 = pneg %p1408_p13  ;;  %p1415_p1 = por %p1414_p7, %p1413_p10 }
  0x24   : > { %p1416_p2 = pnand %p1415_p1, %p1409_p9 }
  0x26   : > { %1419 = shalt.err (!%p1416_p2)
}
  0x27   : > { %s1521_s28 = smov 256   ;;  %s1522_s30 = smov 16  }
  0x28   : > { %1222 = dma.hbm_to_vmem [thread:$0]  (!%p1591_p8), %s1601_s29, 4096, %s1606_s4, %s1609_s5, %s1521_s28, %s1521_s28, %s1522_s30  }
  0x29   : > { %p2691_p7 = scmp.lt.s32.totalorder %s1518_s15, 3  ;;  %p2692_p9 = scmp.ge.s32.totalorder %s1518_s15, 1 }
  0x2a   : > { %s1655_s10 = scalar_lea.hbm %s2647_s0, %s1205_s24  ;;  %s145_s11 = scalar_lea.vmem [#allocation2], %s1184_s23 }
  0x2b   : > { %p1646_p10 = pnand %p2692_p9, %p2691_p7  ;;  %s153_s12 = sshll.u32 %s145_s11, 4  ;;  %s1660_s12 = int_to_ptr.vmem [resolvable:$true] %s153_s12 }
  0x2c   : > { %s1192_s29 = sshll.u32 %s1587_s22, 6  ;;  %s142_s4 = scalar_lea.sflag [#allocation3], %s1587_s22 }
  0x2d   : > { %s2693_s6 = scalar_select %p1646_p10, 1, 0 }
  0x2e   : > { %s1420_s18 = scalar_lea.hbm %s1655_s10, 4096  ;;  %s1425_s24 = scalar_lea.hbm %s2647_s0, 8192 }
  0x2f   : > { %p1421_p0 = scmp.ne.s32.totalorder %s1655_s10, %s1420_s18  ;;  %p1426_p5 = scmp.lt.u32.totalorder %s1655_s10, %s2647_s0 }
  0x30   : > { %p1427_p6 = scmp.lt.u32.totalorder %s1425_s24, %s1420_s18  ;;  %p1429_p13 = scmp.lt.u32.totalorder %s1420_s18, %s1655_s10 }
  0x31   : > { %p1423_p3 = pnand %p1421_p0, %p1615_p12 }
  0x32   : > { %p1428_p11 = por %p1427_p6, %p1426_p5 }
  0x33   : > { %p1424_p4 = pneg %p1423_p3 }
  0x34   : > { %p1430_p1 = por %p1429_p13, %p1428_p11 }
  0x36   : > { %p1431_p2 = pnand %p1430_p1, %p1424_p4 }
  0x38   : > { %1434 = shalt.err (!%p1431_p2)
}
  0x39   : > { %s1435_s23 = scalar_lea.vmem %s1660_s12, 4096  ;;  %s1523_s9 = smov [#allocation2]  }
  0x3a   : > { %p1436_p7 = scmp.ne.s32.totalorder %s1660_s12, %s1435_s23  ;;  %s1440_s11 = sshll.u32 %s1523_s9, 4  ;;  %s1441_s11 = int_to_ptr.vmem [resolvable:$false] %s1440_s11 }
  0x3b   : > { %s1442_s19 = scalar_lea.vmem %s1441_s11, 8192  ;;  %p1443_p3 = scmp.lt.s32.totalorder %s1660_s12, %s1441_s11 }
  0x3c   : > { %p1438_p9 = pnand %p1436_p7, %p1615_p12  ;;  %p1444_p10 = scmp.lt.s32.totalorder %s1442_s19, %s1435_s23 }
  0x3e   : > { %p1439_p0 = pneg %p1438_p9  ;;  %p1445_p5 = por %p1444_p10, %p1443_p3 }
  0x40   : > { %p1446_p6 = pnand %p1445_p5, %p1439_p0 }
  0x42   : > { %1449 = shalt.err (!%p1446_p6)
}
  0x43   : > { %1219 = dma.hbm_to_vmem [thread:$0]  (!%p1591_p8), %s1655_s10, 4096, %s1660_s12, %s142_s4, %s1521_s28, %s1521_s28, %s1522_s30  }
  0x44   : > { %s1209_s18 = sshll.u32 %s1518_s15, 10  ;;  %s189_s26 = scalar_lea.vmem [#allocation6], %s1192_s29 }
  0x45   : > { %s197_s24 = sshll.u32 %s189_s26, 4  ;;  %s1695_s23 = scalar_lea.hbm %s2649_s2, %s1209_s18  ;;  %s1697_s24 = int_to_ptr.vmem [resolvable:$true] %s197_s24 }
  0x46   : > { %s1450_s9 = scalar_lea.hbm %s1695_s23, 1024  ;;  %s1455_s10 = scalar_lea.hbm %s2649_s2, 2048 }
  0x47   : > { %p1451_p10 = scmp.ne.s32.totalorder %s1695_s23, %s1450_s9  ;;  %p1456_p13 = scmp.lt.u32.totalorder %s1695_s23, %s2649_s2 }
  0x48   : > { %p1457_p1 = scmp.lt.u32.totalorder %s1455_s10, %s1450_s9  ;;  %p1459_p7 = scmp.lt.u32.totalorder %s1450_s9, %s1695_s23 }
  0x49   : > { %p1453_p4 = pnand %p1451_p10, %p1615_p12 }
  0x4a   : > { %p1458_p2 = por %p1457_p1, %p1456_p13 }
  0x4b   : > { %p1454_p11 = pneg %p1453_p4 }
  0x4c   : > { %p1460_p9 = por %p1459_p7, %p1458_p2 }
  0x4e   : > { %p1461_p0 = pnand %p1460_p9, %p1454_p11 }
  0x50   : > { %1464 = shalt.err (!%p1461_p0)
}
  0x51   : > { %s1465_s4 = scalar_lea.vmem %s1697_s24, 1024  ;;  %s1524_s11 = smov [#allocation6]  }
  0x52   : > { %p1466_p3 = scmp.ne.s32.totalorder %s1697_s24, %s1465_s4  ;;  %s1470_s19 = sshll.u32 %s1524_s11, 4  ;;  %s1471_s19 = int_to_ptr.vmem [resolvable:$false] %s1470_s19 }
  0x53   : > { %s1472_s18 = scalar_lea.vmem %s1471_s19, 2048  ;;  %p1473_p10 = scmp.lt.s32.totalorder %s1697_s24, %s1471_s19 }
  0x54   : > { %p1468_p5 = pnand %p1466_p3, %p1615_p12  ;;  %p1474_p4 = scmp.lt.s32.totalorder %s1472_s18, %s1465_s4 }
  0x56   : > { %p1469_p6 = pneg %p1468_p5  ;;  %p1475_p13 = por %p1474_p4, %p1473_p10 }
  0x58   : > { %p1476_p1 = pnand %p1475_p13, %p1469_p6 }
  0x5a   : > { %1479 = shalt.err (!%p1476_p1)
}
  0x5b   : > { %1225 = dma.hbm_to_vmem [thread:$0]  (!%p1591_p8), %s1695_s23, 1024, %s1697_s24, %s1609_s5, %s1521_s28, %s1521_s28, %s1522_s30  }
  0x5c   : > { %p2694_p12 = scmp.ne.s32.totalorder %s2693_s6, 0 }
  0x5e   : > { %209 = sbr.rel (%p2694_p12) target bundleno = 487 (0x1e7), region = 32 }
  0x65   : > { %s1727_s7 = sand.u32 1, %s1510_s13   ;;  %p2695_p11 = scmp.ne.s32.totalorder %s2688_s21, 0 }
  0x66   : > { %s1197_s26 = sshll.u32 %s1727_s7, 8  ;;  %s212_s27 = scalar_lea.sflag [#allocation3], %s1727_s7 }
  0x67   : > { %s1731_s8 = scalar_lea.vmem [#allocation2], %s1197_s26 }
  0x68   : > { %1497 = dma.done.wait (%p2695_p11), %s212_s27, 4096  }
  0x69   : > { %1499 = vsyncadd (%p2695_p11), %s212_s27, 4294963200  ;;  %s220_s25 = sand.u32 1, %s1565_s16   ;;  %s1738_s28 = scalar_lea.vmem [#allocation4], %s1197_s26 }
  0x6a   : > { %s221_s5 = scalar_lea.sflag [#allocation5], %s220_s25 }
  0x6b   : > { %1501 = dma.done.wait (%p2695_p11), %s221_s5, 5120  }
  0x6c   : > { %1503 = vsyncadd (%p2695_p11), %s221_s5, 4294962176  ;;  %v277_v0 = vld [vmem:[%s1731_s8] sm:$0xff]  ;;  %v278_v1 = vld [vmem:[%s1731_s8 + $0x8] sm:$0xff]  ;;  %s1199_s21 = sshll.u32 %s1727_s7, 6  ;;  %s1200_s6 = sshll.u32 %s1565_s16, 4 }
  0x6d   : > { %v281_v2 = vld [vmem:[%s1731_s8 + $0x20] sm:$0xff]  ;;  %v1747_v3 = vmul.f32 14.285714, %v277_v0  ;;  %v1749_v4 = vmul.f32 14.285714, %v278_v1  ;;  %v282_v5 = vld [vmem:[%s1731_s8 + $0x28] sm:$0xff] }
  0x6e   : > { %v279_v6 = vld [vmem:[%s1731_s8 + $0x10] sm:$0xff]  ;;  %v1753_v7 = vmul.f32 14.285714, %v281_v2  ;;  %v1755_v8 = vmul.f32 14.285714, %v282_v5  ;;  %v280_v9 = vld [vmem:[%s1731_s8 + $0x18] sm:$0xff] }
  0x6f   : > { %v283_v10 = vld [vmem:[%s1731_s8 + $0x30] sm:$0xff]  ;;  %v373_v11 = vmax.f32 %v1747_v3, %v1749_v4  ;;  %v1761_v12 = vmul.f32 14.285714, %v279_v6  ;;  %v1763_v13 = vmul.f32 14.285714, %v280_v9  ;;  %v284_v14 = vld [vmem:[%s1731_s8 + $0x38] sm:$0xff] }
  0x70   : > { %v285_v15 = vld [vmem:[%s1731_s8 + $0x40] sm:$0xff]  ;;  %v379_v16 = vmax.f32 %v1753_v7, %v1755_v8  ;;  %v1769_v17 = vmul.f32 14.285714, %v283_v10  ;;  %v1771_v18 = vmul.f32 14.285714, %v284_v14  ;;  %v286_v19 = vld [vmem:[%s1731_s8 + $0x48] sm:$0xff] }
  0x71   : > { %v287_v20 = vld [vmem:[%s1731_s8 + $0x50] sm:$0xff]  ;;  %374 = vmax.xlane.f32.xlu0 %v373_v11  ;;  %v376_v21 = vmax.f32 %v1761_v12, %v1763_v13  ;;  %v1777_v22 = vmul.f32 14.285714, %v285_v15  ;;  %v1779_v23 = vmul.f32 14.285714, %v286_v19  ;;  %v288_v24 = vld [vmem:[%s1731_s8 + $0x58] sm:$0xff] }
  0x72   : > { %380 = vmax.xlane.f32.xlu1 %v379_v16  ;;  %v382_v25 = vmax.f32 %v1769_v17, %v1771_v18  ;;  %v1784_v26 = vmul.f32 14.285714, %v287_v20  ;;  %v1786_v27 = vmul.f32 14.285714, %v288_v24  ;;  %v289_v28 = vld [vmem:[%s1731_s8 + $0x60] sm:$0xff]  ;;  %v290_v29 = vld [vmem:[%s1731_s8 + $0x68] sm:$0xff] }
  0x73   : > { %v291_v30 = vld [vmem:[%s1731_s8 + $0x70] sm:$0xff]  ;;  %v292_v31 = vld [vmem:[%s1731_s8 + $0x78] sm:$0xff]  ;;  %v385_v32 = vmax.f32 %v1777_v22, %v1779_v23  ;;  %v1794_v33 = vmul.f32 14.285714, %v289_v28  ;;  %v1796_v34 = vmul.f32 14.285714, %v290_v29 }
  0x74   : > { %v388_v35 = vmax.f32 %v1784_v26, %v1786_v27  ;;  %v1800_v36 = vmul.f32 14.285714, %v291_v30  ;;  %v1802_v37 = vmul.f32 14.285714, %v292_v31  ;;  %v293_v38 = vld [vmem:[%s1731_s8 + $0x80] sm:$0xff]  ;;  %v294_v39 = vld [vmem:[%s1731_s8 + $0x88] sm:$0xff] }
  0x75   : > { %377 = vmax.xlane.f32.xlu0 %v376_v21  ;;  %v295_v40 = vld [vmem:[%s1731_s8 + $0x90] sm:$0xff]  ;;  %v296_v41 = vld [vmem:[%s1731_s8 + $0x98] sm:$0xff]  ;;  %v391_v42 = vmax.f32 %v1794_v33, %v1796_v34  ;;  %v1810_v43 = vmul.f32 14.285714, %v293_v38  ;;  %v1812_v44 = vmul.f32 14.285714, %v294_v39 }
  0x76   : > { %383 = vmax.xlane.f32.xlu1 %v382_v25  ;;  %v394_v45 = vmax.f32 %v1800_v36, %v1802_v37  ;;  %v1816_v46 = vmul.f32 14.285714, %v295_v40  ;;  %v1818_v47 = vmul.f32 14.285714, %v296_v41  ;;  %v297_v48 = vld [vmem:[%s1731_s8 + $0xa0] sm:$0xff]  ;;  %v298_v49 = vld [vmem:[%s1731_s8 + $0xa8] sm:$0xff] }
  0x77   : > { %v299_v50 = vld [vmem:[%s1731_s8 + $0xb0] sm:$0xff]  ;;  %v300_v51 = vld [vmem:[%s1731_s8 + $0xb8] sm:$0xff]  ;;  %v397_v52 = vmax.f32 %v1810_v43, %v1812_v44  ;;  %v1826_v53 = vmul.f32 14.285714, %v297_v48  ;;  %v1828_v54 = vmul.f32 14.285714, %v298_v49 }
  0x78   : > { %2696 = vst [vmem:[#allocation9_spill] sm:$0xff] %v1816_v46  ;;  %2697 = vst [vmem:[#allocation10_spill] sm:$0xff] %v1818_v47  ;;  %v400_v55 = vmax.f32 %v1816_v46, %v1818_v47  ;;  %v1832_v56 = vmul.f32 14.285714, %v299_v50  ;;  %v1834_v57 = vmul.f32 14.285714, %v300_v51 }
  0x79   : > { %386 = vmax.xlane.f32.xlu0 %v385_v32  ;;  %2698 = vst [vmem:[#allocation11_spill] sm:$0xff] %v1826_v53  ;;  %2699 = vst [vmem:[#allocation12_spill] sm:$0xff] %v1828_v54  ;;  %v301_v58 = vld [vmem:[%s1731_s8 + $0xc0] sm:$0xff]  ;;  %v302_v59 = vld [vmem:[%s1731_s8 + $0xc8] sm:$0xff]  ;;  %v403_v62 = vmax.f32 %v1826_v53, %v1828_v54  ;;  %s2001_s30 = scalar_lea.vmem [#allocation6], %s1199_s21  ;;  %p270_p8 = scmp.lt.s32.totalorder %s1200_s6, 31 }
  0x7a   : > { %389 = vmax.xlane.f32.xlu1 %v388_v35  ;;  %2700 = vst [vmem:[#allocation13_spill] sm:$0xff] %v1832_v56  ;;  %2701 = vst [vmem:[#allocation14_spill] sm:$0xff] %v1834_v57  ;;  %v303_v60 = vld [vmem:[%s1731_s8 + $0xd0] sm:$0xff]  ;;  %v304_v61 = vld [vmem:[%s1731_s8 + $0xd8] sm:$0xff]  ;;  %v1842_v63 = vmul.f32 14.285714, %v301_v58  ;;  %v406_v1 = vmax.f32 %v1832_v56, %v1834_v57 }
  0x7b   : > { %v1844_v0 = vmul.f32 14.285714, %v302_v59  ;;  %v1848_v2 = vmul.f32 14.285714, %v303_v60  ;;  %v1850_v5 = vmul.f32 14.285714, %v304_v61 }
  0x7c   : > { %2702 = vst [vmem:[#allocation15_spill] sm:$0xff] %v1842_v63  ;;  %v305_v6 = vld [vmem:[%s1731_s8 + $0xe0] sm:$0xff]  ;;  %v306_v9 = vld [vmem:[%s1731_s8 + $0xe8] sm:$0xff]  ;;  %v307_v10 = vld [vmem:[%s1731_s8 + $0xf0] sm:$0xff]  ;;  %s2864_s6 = smov (!%p270_p8, %s1200_s6), 31 }
  0x7d   : > { %392 = vmax.xlane.f32.xlu0 %v391_v42  ;;  %2703 = vst [vmem:[#allocation16_spill] sm:$0xff] %v1844_v0  ;;  %2704 = vst [vmem:[#allocation17_spill] sm:$0xff] %v1848_v2  ;;  %v308_v11 = vld [vmem:[%s1731_s8 + $0xf8] sm:$0xff]  ;;  %v409_v14 = vmax.f32 %v1842_v63, %v1844_v0  ;;  %v1858_v15 = vmul.f32 14.285714, %v305_v6  ;;  %v412_v19 = vmax.f32 %v1848_v2, %v1850_v5  ;;  %v1873_v28 = vld [vmem:[%s1738_s28] sm:$0xff] }
  0x7e   : > { %395 = vmax.xlane.f32.xlu1 %v394_v45  ;;  %2705 = vst [vmem:[#allocation18_spill] sm:$0xff] %v1850_v5  ;;  %v1860_v16 = vmul.f32 14.285714, %v306_v9  ;;  %v1864_v20 = vmul.f32 14.285714, %v307_v10  ;;  %v1876_v29 = vld [vmem:[%s1738_s28 + $0x8] sm:$0xff] }
  0x7f   : > { %2706 = vst [vmem:[#allocation19_spill] sm:$0xff] %v1858_v15  ;;  %v1866_v21 = vmul.f32 14.285714, %v308_v11  ;;  %v1879_v30 = vld [vmem:[%s1738_s28 + $0x10] sm:$0xff]  ;;  %v1882_v31 = vld [vmem:[%s1738_s28 + $0x18] sm:$0xff]  ;;  %v797_v32 = vadd.f32 %v1876_v29, %v1873_v28  ;;  %v1889_v38 = vld [vmem:[%s1738_s28 + $0x20] sm:$0xff] }
  0x80   : > { %2707 = vst [vmem:[#allocation20_spill] sm:$0xff] %v1860_v16  ;;  %2708 = vst [vmem:[#allocation21_spill] sm:$0xff] %v1864_v20  ;;  %v415_v24 = vmax.f32 %v1858_v15, %v1860_v16  ;;  %v800_v35 = vadd.f32 %v1882_v31, %v1879_v30  ;;  %v1892_v39 = vld [vmem:[%s1738_s28 + $0x28] sm:$0xff]  ;;  %v1895_v40 = vld [vmem:[%s1738_s28 + $0x30] sm:$0xff]  ;;  %s1201_s16 = sshll.u32 %s2864_s6, 3 }
  0x81   : > { %398 = vmax.xlane.f32.xlu0 %v397_v52  ;;  %2709 = vst [vmem:[#allocation22_spill] sm:$0xff] %v1866_v21  ;;  %v418_v25 = vmax.f32 %v1864_v20, %v1866_v21  ;;  %v1898_v41 = vld [vmem:[%s1738_s28 + $0x38] sm:$0xff]  ;;  %v803_v42 = vadd.f32 %v1892_v39, %v1889_v38  ;;  %v1905_v48 = vld [vmem:[%s1738_s28 + $0x40] sm:$0xff]  ;;  %v1908_v49 = vld [vmem:[%s1738_s28 + $0x48] sm:$0xff]  ;;  %s2572_s9 = scalar_lea.vmem %s2650_s3, %s1201_s16 }
  0x82   : > { %401 = vmax.xlane.f32.xlu1 %v400_v55  ;;  %v806_v45 = vadd.f32 %v1898_v41, %v1895_v40  ;;  %v1911_v50 = vld [vmem:[%s1738_s28 + $0x50] sm:$0xff]  ;;  %v1914_v51 = vld [vmem:[%s1738_s28 + $0x58] sm:$0xff]  ;;  %v809_v52 = vadd.f32 %v1908_v49, %v1905_v48  ;;  %v1921_v58 = vld [vmem:[%s1738_s28 + $0x60] sm:$0xff] }
  0x83   : > { %v812_v55 = vadd.f32 %v1914_v51, %v1911_v50  ;;  %2710 = vst [vmem:[#allocation23_spill] sm:$0xff] %v1921_v58  ;;  %v1924_v59 = vld [vmem:[%s1738_s28 + $0x68] sm:$0xff]  ;;  %v1927_v60 = vld [vmem:[%s1738_s28 + $0x70] sm:$0xff]  ;;  %v1930_v61 = vld [vmem:[%s1738_s28 + $0x78] sm:$0xff] }
  0x84   : > { %2711 = vst [vmem:[#allocation24_spill] sm:$0xff] %v1924_v59  ;;  %2712 = vst [vmem:[#allocation25_spill] sm:$0xff] %v1927_v60  ;;  %v1937_v6 = vld [vmem:[%s1738_s28 + $0x80] sm:$0xff]  ;;  %v1940_v9 = vld [vmem:[%s1738_s28 + $0x88] sm:$0xff] }
  0x85   : > { %404 = vmax.xlane.f32.xlu0 %v403_v62  ;;  %2713 = vst [vmem:[#allocation26_spill] sm:$0xff] %v1930_v61  ;;  %v815_v62 = vadd.f32 %v1924_v59, %v1921_v58  ;;  %2714 = vst [vmem:[#allocation27_spill] sm:$0xff] %v1937_v6  ;;  %v1943_v10 = vld [vmem:[%s1738_s28 + $0x90] sm:$0xff]  ;;  %v1946_v11 = vld [vmem:[%s1738_s28 + $0x98] sm:$0xff] }
  0x86   : > { %407 = vmax.xlane.f32.xlu1 %v406_v1  ;;  %v818_v1 = vadd.f32 %v1930_v61, %v1927_v60  ;;  %2715 = vst [vmem:[#allocation28_spill] sm:$0xff] %v1940_v9  ;;  %2716 = vst [vmem:[#allocation29_spill] sm:$0xff] %v1943_v10  ;;  %v521_v61 = vld [vmem:[%s2001_s30 + $0x20] sm:$0xff]  ;;  %v522_v60 = vld [vmem:[%s2001_s30 + $0x28] sm:$0xff] }
  0x87   : > { %2717 = vst [vmem:[#allocation30_spill] sm:$0xff] %v1946_v11  ;;  %vm529_vm4 = vnez %v521_v61  ;;  %vm530_vm5 = vnez %v522_v60 }
  0x89   : > { %410 = vmax.xlane.f32.xlu0 %v409_v14  ;;  %v821_v14 = vadd.f32 %v1940_v9, %v1937_v6 }
  0x8a   : > { %413 = vmax.xlane.f32.xlu1 %v412_v19  ;;  %v824_v19 = vadd.f32 %v1946_v11, %v1943_v10 }
  0x8d   : > { %416 = vmax.xlane.f32.xlu0 %v415_v24  ;;  %v1953_v24 = vld [vmem:[%s1738_s28 + $0xa0] sm:$0xff] }
  0x8e   : > { %419 = vmax.xlane.f32.xlu1 %v418_v25  ;;  %2718 = vst [vmem:[#allocation31_spill] sm:$0xff] %v1953_v24  ;;  %v1956_v25 = vld [vmem:[%s1738_s28 + $0xa8] sm:$0xff] }
  0x8f   : > { %2719 = vst [vmem:[#allocation32_spill] sm:$0xff] %v1956_v25 }
  0x91   : > { %798 = vadd.xlane.f32.xlu0 %v797_v32  ;;  %v1959_v32 = vld [vmem:[%s1738_s28 + $0xb0] sm:$0xff] }
  0x92   : > { %801 = vadd.xlane.f32.xlu1 %v800_v35  ;;  %2720 = vst [vmem:[#allocation33_spill] sm:$0xff] %v1959_v32  ;;  %v1962_v35 = vld [vmem:[%s1738_s28 + $0xb8] sm:$0xff] }
  0x93   : > { %2721 = vst [vmem:[#allocation34_spill] sm:$0xff] %v1962_v35 }
  0x95   : > { %804 = vadd.xlane.f32.xlu0 %v803_v42  ;;  %v827_v42 = vadd.f32 %v1956_v25, %v1953_v24  ;;  %v1985_v25 = vld [vmem:[%s1738_s28 + $0xe0] sm:$0xff]  ;;  %v1994_v24 = vld [vmem:[%s1738_s28 + $0xf8] sm:$0xff] }
  0x96   : > { %807 = vadd.xlane.f32.xlu1 %v806_v45  ;;  %v830_v45 = vadd.f32 %v1962_v35, %v1959_v32  ;;  %2726 = vst [vmem:[#allocation39_spill] sm:$0xff] %v1985_v25  ;;  %v1988_v35 = vld [vmem:[%s1738_s28 + $0xe8] sm:$0xff]  ;;  %v1991_v32 = vld [vmem:[%s1738_s28 + $0xf0] sm:$0xff]  ;;  %2729 = vst [vmem:[#allocation42_spill] sm:$0xff] %v1994_v24 }
  0x97   : > { %2727 = vst [vmem:[#allocation40_spill] sm:$0xff] %v1988_v35  ;;  %2728 = vst [vmem:[#allocation41_spill] sm:$0xff] %v1991_v32  ;;  %v839_v11 = vadd.f32 %v1988_v35, %v1985_v25  ;;  %v519_v25 = vld [vmem:[%s2001_s30 + $0x10] sm:$0xff] }
  0x98   : > { %vm527_vm2 = vnez %v519_v25 }
  0x99   : > { %810 = vadd.xlane.f32.xlu0 %v809_v52  ;;  %v1969_v52 = vld [vmem:[%s1738_s28 + $0xc0] sm:$0xff] }
  0x9a   : > { %813 = vadd.xlane.f32.xlu1 %v812_v55  ;;  %2722 = vst [vmem:[#allocation35_spill] sm:$0xff] %v1969_v52  ;;  %v1972_v55 = vld [vmem:[%s1738_s28 + $0xc8] sm:$0xff] }
  0x9b   : > { %2723 = vst [vmem:[#allocation36_spill] sm:$0xff] %v1972_v55 }
  0x9d   : > { %816 = vadd.xlane.f32.xlu0 %v815_v62  ;;  %v1975_v62 = vld [vmem:[%s1738_s28 + $0xd0] sm:$0xff] }
  0x9e   : > { %819 = vadd.xlane.f32.xlu1 %v818_v1  ;;  %2724 = vst [vmem:[#allocation37_spill] sm:$0xff] %v1975_v62  ;;  %v1978_v1 = vld [vmem:[%s1738_s28 + $0xd8] sm:$0xff] }
  0x9f   : > { %2725 = vst [vmem:[#allocation38_spill] sm:$0xff] %v1978_v1 }
  0xa1   : > { %822 = vadd.xlane.f32.xlu0 %v821_v14  ;;  %v833_v14 = vadd.f32 %v1972_v55, %v1969_v52 }
  0xa2   : > { %825 = vadd.xlane.f32.xlu1 %v824_v19  ;;  %v836_v19 = vadd.f32 %v1978_v1, %v1975_v62  ;;  %v518_v1 = vld [vmem:[%s2001_s30 + $0x8] sm:$0xff]  ;;  %v520_v62 = vld [vmem:[%s2001_s30 + $0x18] sm:$0xff] }
  0xa3   : > { %vm526_vm1 = vnez %v518_v1  ;;  %vm528_vm3 = vnez %v520_v62 }
  0xa5   : > { %828 = vadd.xlane.f32.xlu0 %v827_v42  ;;  %v842_v42 = vadd.f32 %v1994_v24, %v1991_v32 }
  0xa6   : > { %831 = vadd.xlane.f32.xlu1 %v830_v45  ;;  %v517_v45 = vld [vmem:[%s2001_s30] sm:$0xff] }
  0xa7   : > { %vm525_vm0 = vnez %v517_v45 }
  0xa9   : > { %834 = vadd.xlane.f32.xlu0 %v833_v14  ;;  %v2683_v14 = vmov 0  }
  0xaa   : > { %837 = vadd.xlane.f32.xlu1 %v836_v19  ;;  %v533_v35 = vsel %vm525_vm0, 16843009, %v2683_v14  ;;  %v534_v19 = vsel %vm526_vm1, 16843009, %v2683_v14  ;;  %v535_v1 = vsel %vm527_vm2, 16843009, %v2683_v14 }
  0xab   : > { %v541_v24 = vunpack.c.0.s8 %v533_v35  ;;  %v544_v32 = vunpack.c.1.s8 %v534_v19  ;;  %v545_v55 = vunpack.c.2.s8 %v533_v35  ;;  %v546_v52 = vunpack.c.2.s8 %v534_v19 }
  0xac   : > { %v536_v9 = vsel %vm528_vm3, 16843009, %v2683_v14  ;;  %v547_v21 = vunpack.c.3.s8 %v533_v35  ;;  %v548_v20 = vunpack.c.3.s8 %v534_v19  ;;  %v549_v16 = vunpack.c.0.s8 %v535_v1 }
  0xad   : > { %840 = vadd.xlane.f32.xlu0 %v839_v11  ;;  %v542_v11 = vunpack.c.0.s8 %v534_v19  ;;  %v577_v6 = vpack.c.b16 %v546_v52, %v545_v55  ;;  %v550_v15 = vunpack.c.0.s8 %v536_v9  ;;  %v551_v5 = vunpack.c.1.s8 %v535_v1 }
  0xae   : > { %843 = vadd.xlane.f32.xlu1 %v842_v42  ;;  %v543_v42 = vunpack.c.1.s8 %v533_v35  ;;  %v552_v25 = vunpack.c.1.s8 %v536_v9  ;;  %v553_v52 = vunpack.c.2.s8 %v535_v1  ;;  %v537_v55 = vsel %vm529_vm4, 16843009, %v2683_v14 }
  0xaf   : > { %v573_v10 = vpack.c.b16 %v542_v11, %v541_v24  ;;  %v523_v24 = vld [vmem:[%s2001_s30 + $0x30] sm:$0xff]  ;;  %v578_v62 = vpack.c.b8 %v577_v6, %v577_v6  ;;  %v579_v11 = vpack.c.b16 %v548_v20, %v547_v21  ;;  %v554_v19 = vunpack.c.2.s8 %v536_v9 }
  0xb0   : > { %v575_v45 = vpack.c.b16 %v544_v32, %v543_v42  ;;  %v524_v32 = vld [vmem:[%s2001_s30 + $0x38] sm:$0xff]  ;;  %v581_v42 = vpack.c.b16 %v550_v15, %v549_v16  ;;  %v583_v35 = vpack.c.b16 %v552_v25, %v551_v5  ;;  %vm531_vm8 = vnez %v523_v24 }
  0xb1   : > { %v574_v59 = vpack.c.b8 %v573_v10, %v573_v10  ;;  %v538_v10 = vsel %vm530_vm5, 16843009, %v2683_v14  ;;  %vm532_vm9 = vnez %v524_v32  ;;  %v555_v60 = vunpack.c.3.s8 %v535_v1 }
  0xb2   : > { %v576_v58 = vpack.c.b8 %v575_v45, %v575_v45  ;;  %v556_v61 = vunpack.c.3.s8 %v536_v9  ;;  %vm2023_vm10 = vnez %v578_v62  ;;  %v557_v15 = vunpack.c.0.s8 %v537_v55 }
  0xb3   : > { %vm605_vm6 = vnez %v574_v59  ;;  %v558_v16 = vunpack.c.0.s8 %v538_v10  ;;  %v580_v21 = vpack.c.b8 %v579_v11, %v579_v11  ;;  %v2028_v5 = vsel %vm531_vm8, 16843009, %v2683_v14 }
  0xb4   : > { %vm606_vm7 = vnez %v576_v58  ;;  %v2018_v45 = vsel %vm605_vm6, 16843009, %v2683_v14  ;;  %v582_v58 = vpack.c.b8 %v581_v42, %v581_v42  ;;  %v2031_v6 = vsel %vm532_vm9, 16843009, %v2683_v14 }
  0xb5   : > { %v2021_v59 = vsel %vm606_vm7, 16843009, %v2683_v14  ;;  %v584_v25 = vpack.c.b8 %v583_v35, %v583_v35  ;;  %v585_v1 = vpack.c.b16 %v554_v19, %v553_v52  ;;  %v559_v9 = vunpack.c.1.s8 %v537_v55 }
  0xb6   : > { %v560_v24 = vunpack.c.1.s8 %v538_v10  ;;  %v587_v32 = vpack.c.b16 %v556_v61, %v555_v60  ;;  %v561_v2 = vunpack.c.2.s8 %v537_v55  ;;  %v562_v62 = vunpack.c.2.s8 %v538_v10 }
  0xb7   : > { %v563_v0 = vunpack.c.3.s8 %v537_v55  ;;  %v589_v63 = vpack.c.b16 %v558_v16, %v557_v15  ;;  %v564_v57 = vunpack.c.3.s8 %v538_v10  ;;  %v565_v56 = vunpack.c.0.s8 %v2028_v5 }
  0xb8   : > { %v566_v11 = vunpack.c.0.s8 %v2031_v6  ;;  %v567_v14 = vunpack.c.1.s8 %v2028_v5  ;;  %v568_v52 = vunpack.c.1.s8 %v2031_v6  ;;  %v2732_v19 = vmov 0  }
  0xb9   : > { %v2043_v55 = vsel %vm2023_vm10, 16843009, %v2732_v19  ;;  %vm2045_vm11 = vnez %v580_v21  ;;  %v591_v60 = vpack.c.b16 %v560_v24, %v559_v9  ;;  %vm2049_vm12 = vnez %v582_v58 }
  0xba   : > { %vm2053_vm13 = vnez %v584_v25  ;;  %v586_v16 = vpack.c.b8 %v585_v1, %v585_v1  ;;  %v593_v35 = vpack.c.b16 %v562_v62, %v561_v2  ;;  %v588_v54 = vpack.c.b8 %v587_v32, %v587_v32 }
  0xbb   : > { %v590_v42 = vpack.c.b8 %v589_v63, %v589_v63  ;;  %v595_v20 = vpack.c.b16 %v564_v57, %v563_v0  ;;  %v597_v53 = vpack.c.b16 %v566_v11, %v565_v56  ;;  %v640_v21 = vunpack.c.1.s8 %v2021_v59 }
  0xbc   : > { %v599_v47 = vpack.c.b16 %v568_v52, %v567_v14  ;;  %v569_v46 = vunpack.c.2.s8 %v2028_v5  ;;  %v570_v58 = vunpack.c.2.s8 %v2031_v6  ;;  %v641_v9 = vunpack.c.0.s8 %v2043_v55 }
  0xbd   : > { %v642_v25 = vunpack.c.1.s8 %v2043_v55  ;;  %v2065_v1 = vsel %vm2045_vm11, 16843009, %v2732_v19  ;;  %v592_v2 = vpack.c.b8 %v591_v60, %v591_v60  ;;  %v2070_v56 = vsel %vm2049_vm12, 16843009, %v2732_v19 }
  0xbe   : > { %v2075_v57 = vsel %vm2053_vm13, 16843009, %v2732_v19  ;;  %vm611_vm14 = vnez %v586_v16  ;;  %v594_v63 = vpack.c.b8 %v593_v35, %v593_v35  ;;  %vm612_vm15 = vnez %v588_v54 }
  0xbf   : > { %vm613_vm0 = vnez %v590_v42  ;;  %v596_v0 = vpack.c.b8 %v595_v20, %v595_v20  ;;  %v598_v14 = vpack.c.b8 %v597_v53, %v597_v53  ;;  %v600_v62 = vpack.c.b8 %v599_v47, %v599_v47 }
  0xc0   : > { %v601_v11 = vpack.c.b16 %v570_v58, %v569_v46  ;;  %v2082_v60 = vsel %vm611_vm14, 16843009, %v2732_v19  ;;  %vm614_vm1 = vnez %v592_v2  ;;  %v2086_v54 = vsel %vm612_vm15, 16843009, %v2732_v19 }
  0xc1   : > { %v2089_v53 = vsel %vm613_vm0, 16843009, %v2732_v19  ;;  %vm615_vm2 = vnez %v594_v63  ;;  %vm616_vm3 = vnez %v596_v0  ;;  %vm617_vm4 = vnez %v598_v14 }
  0xc2   : > { %v571_v46 = vunpack.c.3.s8 %v2028_v5  ;;  %v572_v47 = vunpack.c.3.s8 %v2031_v6  ;;  %v2095_v61 = vsel %vm614_vm1, 16843009, %v2732_v19  ;;  %vm618_vm5 = vnez %v600_v62 }
  0xc3   : > { %v602_v15 = vpack.c.b8 %v601_v11, %v601_v11  ;;  %v2101_v2 = vsel %vm615_vm2, 16843009, %v2732_v19  ;;  %v2106_v63 = vsel %vm616_vm3, 16843009, %v2732_v19  ;;  %v2109_v0 = vsel %vm617_vm4, 16843009, %v2732_v19 }
  0xc4   : > { %v2114_v11 = vsel %vm618_vm5, 16843009, %v2732_v19  ;;  %v2116_v58 = vpack.c.b16 %v572_v47, %v571_v46  ;;  %vm2172_vm10 = vcmp.ne.s32.totalorder %v640_v21, 0  ;;  %vm2178_vm11 = vcmp.ne.s32.totalorder %v641_v9, 0 }
  0xc5   : > { %vm619_vm6 = vnez %v602_v15  ;;  %vm2191_vm12 = vcmp.ne.s32.totalorder %v642_v25, 0  ;;  %v2754_v25 = vunpack.c.0.s8 %v2065_v1  ;;  %v2792_v9 = vunpack.c.0.s8 %v2089_v53 }
  0xc6   : > { %v2132_v42 = vsel %vm619_vm6, 16843009, %v2732_v19 }
  0xc7   : > { %vm2207_vm13 = vcmp.ne.s32.totalorder %v2754_v25, 0  ;;  %v2776_v25 = vunpack.c.0.s8 %v2082_v60 }
  0xc9   : > { %vm2273_vm3 = vcmp.ne.s32.totalorder %v2776_v25, 0 }
  0xfe   : > { %v375_v16 = vpop.xlane.xlu0 %374 }
  0xff   : > { %v421_v10 = vsub.f32 %v1747_v3, %v375_v16  ;;  %v422_v46 = vsub.f32 %v1749_v4, %v375_v16  ;;  %v381_v47 = vpop.xlane.xlu1 %380 }
 0x100   : > { %v425_v15 = vsub.f32 %v1753_v7, %v381_v47  ;;  %v426_v6 = vsub.f32 %v1755_v8, %v381_v47 }
 0x101   : > { %v453_v62 = vmul.f32 1.442695, %v421_v10  ;;  %v455_v35 = vmul.f32 1.442695, %v422_v46  ;;  %v845_v3 = vmul.f32 %v421_v10, %v1873_v28  ;;  %v846_v4 = vmul.f32 %v422_v46, %v1876_v29 }
 0x102   : > { %v461_v16 = vmul.f32 1.442695, %v425_v15  ;;  %v463_v20 = vmul.f32 1.442695, %v426_v6  ;;  %v378_v52 = vpop.xlane.xlu0 %377  ;;  %v849_v5 = vmul.f32 %v425_v15, %v1889_v38  ;;  %v850_v7 = vmul.f32 %v426_v6, %v1892_v39 }
 0x103   : > { %1262 = vpow2.f32 %v453_v62  ;;  %v423_v8 = vsub.f32 %v1761_v12, %v378_v52  ;;  %v424_v47 = vsub.f32 %v1763_v13, %v378_v52  ;;  %v877_v32 = vadd.f32 %v846_v4, %v845_v3  ;;  %v384_v14 = vpop.xlane.xlu1 %383 }
 0x104   : > { %1264 = vpow2.f32 %v455_v35  ;;  %v427_v24 = vsub.f32 %v1769_v17, %v384_v14  ;;  %v428_v28 = vsub.f32 %v1771_v18, %v384_v14  ;;  %v883_v29 = vadd.f32 %v850_v7, %v849_v5 }
 0x105   : > { %1266 = vpow2.f32 %v461_v16  ;;  %v457_v10 = vmul.f32 1.442695, %v423_v8  ;;  %v459_v46 = vmul.f32 1.442695, %v424_v47  ;;  %878 = vadd.xlane.f32.xlu0 %v877_v32  ;;  %v847_v38 = vmul.f32 %v423_v8, %v1879_v30 }
 0x106   : > { %v2739_v39 = vunpack.c.0.s8 %v2018_v45  ;;  %v2742_v13 = vunpack.c.1.s8 %v2018_v45  ;;  %1268 = vpow2.f32 %v463_v20  ;;  %v465_v17 = vmul.f32 1.442695, %v427_v24  ;;  %v387_v35 = vpop.xlane.xlu0 %386 }
 0x107   : > { %v467_v18 = vmul.f32 1.442695, %v428_v28  ;;  %v848_v32 = vmul.f32 %v424_v47, %v1882_v31  ;;  %1270 = vpow2.f32 %v457_v10  ;;  %v429_v30 = vsub.f32 %v1777_v22, %v387_v35  ;;  %v390_v6 = vpop.xlane.xlu1 %389 }
 0x108   : > { %vm2147_vm7 = vcmp.ne.s32.totalorder %v2739_v39, 0  ;;  %vm2153_vm8 = vcmp.ne.s32.totalorder %v2742_v13, 0  ;;  %v430_v5 = vsub.f32 %v1779_v23, %v387_v35  ;;  %v851_v14 = vmul.f32 %v427_v24, %v1895_v40 }
 0x109   : > { %1272 = vpow2.f32 %v459_v46  ;;  %v880_v45 = vadd.f32 %v848_v32, %v847_v38  ;;  %v431_v62 = vsub.f32 %v1784_v26, %v390_v6  ;;  %v432_v15 = vsub.f32 %v1786_v27, %v390_v6  ;;  %884 = vadd.xlane.f32.xlu0 %v883_v29 }
 0x10a   : > { %v2745_v20 = vunpack.c.0.s8 %v2021_v59  ;;  %1274 = vpow2.f32 %v465_v17  ;;  %v469_v31 = vmul.f32 1.442695, %v429_v30  ;;  %v471_v22 = vmul.f32 1.442695, %v430_v5  ;;  %v393_v4 = vpop.xlane.xlu0 %392 }
 0x10b   : > { %v852_v23 = vmul.f32 %v428_v28, %v1898_v41  ;;  %1276 = vpow2.f32 %v467_v18  ;;  %881 = vadd.xlane.f32.xlu1 %v880_v45  ;;  %v473_v27 = vmul.f32 1.442695, %v431_v62  ;;  %v475_v24 = vmul.f32 1.442695, %v432_v15  ;;  %v396_v7 = vpop.xlane.xlu1 %395 }
 0x10c   : > { %vm2165_vm9 = vcmp.ne.s32.totalorder %v2745_v20, 0  ;;  %v853_v16 = vmul.f32 %v429_v30, %v1905_v48  ;;  %1278 = vpow2.f32 %v469_v31  ;;  %v2184_v41 = vsub.f32 %v1794_v33, %v393_v4 }
 0x10d   : > { %v2187_v59 = vsub.f32 %v1796_v34, %v393_v4  ;;  %v886_v21 = vadd.f32 %v852_v23, %v851_v14  ;;  %1280 = vpow2.f32 %v471_v22  ;;  %v854_v8 = vmul.f32 %v430_v5, %v1908_v49  ;;  %v1263_v47 = vpop.eup %1262  ;;  %v2770_v22 = vld [vmem:[#allocation10_spill] sm:$0xff] }
 0x10e   : > { %v2197_v48 = vsub.f32 %v1800_v36, %v396_v7  ;;  %v2200_v33 = vsub.f32 %v1802_v37, %v396_v7  ;;  %1282 = vpow2.f32 %v473_v27  ;;  %v477_v34 = vmul.f32 1.442695, %v2184_v41  ;;  %v1265_v49 = vpop.eup %1264  ;;  %v399_v46 = vpop.xlane.xlu0 %398  ;;  %v2774_v7 = vld [vmem:[#allocation11_spill] sm:$0xff] }
 0x10f   : > { %v479_v28 = vmul.f32 1.442695, %v2187_v59  ;;  %v855_v55 = vmul.f32 %v431_v62, %v1911_v50  ;;  %1284 = vpow2.f32 %v475_v24  ;;  %887 = vadd.xlane.f32.xlu1 %v886_v21  ;;  %v889_v36 = vadd.f32 %v854_v8, %v853_v16  ;;  %v1267_v17 = vpop.eup %1266  ;;  %v402_v32 = vpop.xlane.xlu1 %401 }
 0x110   : > { %v481_v37 = vmul.f32 1.442695, %v2197_v48  ;;  %v483_v10 = vmul.f32 1.442695, %v2200_v33  ;;  %v2757_v38 = vunpack.c.1.s8 %v2065_v1  ;;  %v2760_v50 = vunpack.c.0.s8 %v2070_v56  ;;  %v1269_v6 = vpop.eup %1268 }
 0x111   : > { %1286 = vpow2.f32 %v477_v34  ;;  %v2226_v18 = vsub.f32 %v1810_v43, %v399_v46  ;;  %v2229_v35 = vsub.f32 %v1812_v44, %v399_v46  ;;  %v856_v1 = vmul.f32 %v432_v15, %v1914_v51  ;;  %890 = vadd.xlane.f32.xlu0 %v889_v36  ;;  %v2766_v44 = vld [vmem:[#allocation9_spill] sm:$0xff]  ;;  %v1271_v51 = vpop.eup %1270 }
 0x112   : > { %vm2215_vm14 = vcmp.ne.s32.totalorder %v2757_v38, 0  ;;  %vm2221_vm15 = vcmp.ne.s32.totalorder %v2760_v50, 0  ;;  %v2763_v30 = vunpack.c.1.s8 %v2070_v56  ;;  %1288 = vpow2.f32 %v479_v28  ;;  %v405_v24 = vpop.xlane.xlu0 %404 }
 0x113   : > { %v701_v14 = vsel %vm2147_vm7, %v1263_v47, 0.0  ;;  %v702_v43 = vsel %vm2153_vm8, %v1265_v49, 0.0  ;;  %v2243_v45 = vsub.f32 %v2766_v44, %v402_v32  ;;  %1290 = vpow2.f32 %v481_v37  ;;  %v1273_v12 = vpop.eup %1272  ;;  %v2775_v47 = vld [vmem:[#allocation12_spill] sm:$0xff] }
 0x114   : > { %vm2234_vm0 = vcmp.ne.s32.totalorder %v2763_v30, 0  ;;  %v485_v56 = vmul.f32 1.442695, %v2226_v18  ;;  %v487_v62 = vmul.f32 1.442695, %v2229_v35  ;;  %v892_v15 = vadd.f32 %v856_v1, %v855_v55  ;;  %v1275_v21 = vpop.eup %1274  ;;  %v408_v55 = vpop.xlane.xlu1 %407 }
 0x115   : > { %v2767_v20 = vunpack.c.0.s8 %v2075_v57  ;;  %1292 = vpow2.f32 %v483_v10  ;;  %v733_v52 = vadd.f32 %v702_v43, %v701_v14  ;;  %v2254_v23 = vsub.f32 %v2770_v22, %v402_v32  ;;  %v1277_v49 = vpop.eup %1276  ;;  %v2788_v43 = vld [vmem:[#allocation13_spill] sm:$0xff] }
 0x116   : > { %v489_v27 = vmul.f32 1.442695, %v2243_v45  ;;  %v2771_v4 = vunpack.c.1.s8 %v2075_v57  ;;  %1294 = vpow2.f32 %v485_v56  ;;  %893 = vadd.xlane.f32.xlu1 %v892_v15  ;;  %v2264_v8 = vsub.f32 %v2774_v7, %v405_v24  ;;  %v1279_v38 = vpop.eup %1278 }
 0x117   : > { %vm2249_vm1 = vcmp.ne.s32.totalorder %v2767_v20, 0  ;;  %v2267_v34 = vsub.f32 %v2775_v47, %v405_v24  ;;  %v703_v28 = vsel %vm2165_vm9, %v1271_v51, 0.0  ;;  %1296 = vpow2.f32 %v487_v62  ;;  %734 = vadd.xlane.f32.xlu0 %v733_v52  ;;  %v2789_v51 = vld [vmem:[#allocation14_spill] sm:$0xff]  ;;  %v411_v62 = vpop.xlane.xlu0 %410  ;;  %v2790_v20 = vld [vmem:[#allocation15_spill] sm:$0xff]  ;;  %v2791_v52 = vld [vmem:[#allocation16_spill] sm:$0xff] }
 0x118   : > { %vm2259_vm2 = vcmp.ne.s32.totalorder %v2771_v4, 0  ;;  %v491_v36 = vmul.f32 1.442695, %v2254_v23  ;;  %v704_v37 = vsel %vm2172_vm10, %v1273_v12, 0.0  ;;  %v705_v10 = vsel %vm2178_vm11, %v1267_v17, 0.0  ;;  %v1281_v17 = vpop.eup %1280 }
 0x119   : > { %v2779_v3 = vunpack.c.1.s8 %v2082_v60  ;;  %1298 = vpow2.f32 %v489_v27  ;;  %v493_v50 = vmul.f32 1.442695, %v2264_v8  ;;  %v495_v1 = vmul.f32 1.442695, %v2267_v34  ;;  %v1283_v15 = vpop.eup %1282  ;;  %v414_v27 = vpop.xlane.xlu1 %413 }
 0x11a   : > { %v736_v32 = vadd.f32 %v704_v37, %v703_v28  ;;  %v2782_v30 = vunpack.c.0.s8 %v2086_v54  ;;  %v2785_v26 = vunpack.c.1.s8 %v2086_v54  ;;  %1300 = vpow2.f32 %v491_v36  ;;  %v1285_v25 = vpop.eup %1284 }
 0x11b   : > { %vm2284_vm4 = vcmp.ne.s32.totalorder %v2779_v3, 0  ;;  %v706_v14 = vsel %vm2191_vm12, %v1269_v6, 0.0  ;;  %v2305_v44 = vsub.f32 %v2788_v43, %v408_v55  ;;  %v2308_v56 = vsub.f32 %v2789_v51, %v408_v55 }
 0x11c   : > { %vm2292_vm5 = vcmp.ne.s32.totalorder %v2782_v30, 0  ;;  %vm2298_vm6 = vcmp.ne.s32.totalorder %v2785_v26, 0  ;;  %1302 = vpow2.f32 %v493_v50  ;;  %737 = vadd.xlane.f32.xlu1 %v736_v32  ;;  %v739_v54 = vadd.f32 %v706_v14, %v705_v10 }
 0x11d   : > { %v2311_v12 = vsub.f32 %v2790_v20, %v411_v62  ;;  %v2314_v22 = vsub.f32 %v2791_v52, %v411_v62  ;;  %vm2318_vm7 = vcmp.ne.s32.totalorder %v2792_v9, 0  ;;  %v2795_v24 = vunpack.c.1.s8 %v2089_v53  ;;  %v2817_v20 = vld [vmem:[#allocation18_spill] sm:$0xff]  ;;  %v2818_v9 = vld [vmem:[#allocation19_spill] sm:$0xff] }
 0x11e   : > { %v2798_v7 = vunpack.c.0.s8 %v2095_v61  ;;  %v2801_v28 = vunpack.c.1.s8 %v2095_v61  ;;  %1304 = vpow2.f32 %v495_v1  ;;  %v497_v53 = vmul.f32 1.442695, %v2305_v44  ;;  %v1287_v61 = vpop.eup %1286  ;;  %740 = vadd.xlane.f32.xlu0 %v739_v54 }
 0x11f   : > { %vm2324_vm8 = vcmp.ne.s32.totalorder %v2795_v24, 0  ;;  %v499_v36 = vmul.f32 1.442695, %v2308_v56  ;;  %v707_v37 = vsel %vm2207_vm13, %v1275_v21, 0.0  ;;  %v2804_v10 = vunpack.c.0.s8 %v2101_v2  ;;  %v1289_v43 = vpop.eup %1288 }
 0x120   : > { %vm2330_vm9 = vcmp.ne.s32.totalorder %v2798_v7, 0  ;;  %vm2336_vm10 = vcmp.ne.s32.totalorder %v2801_v28, 0  ;;  %v501_v50 = vmul.f32 1.442695, %v2311_v12  ;;  %v503_v32 = vmul.f32 1.442695, %v2314_v22 }
 0x121   : > { %vm2346_vm11 = vcmp.ne.s32.totalorder %v2804_v10, 0  ;;  %v708_v1 = vsel %vm2215_vm14, %v1277_v49, 0.0  ;;  %v709_v30 = vsel %vm2221_vm15, %v1279_v38, 0.0  ;;  %v2807_v29 = vunpack.c.1.s8 %v2101_v2  ;;  %v2813_v49 = vld [vmem:[#allocation17_spill] sm:$0xff]  ;;  %v417_v2 = vpop.xlane.xlu0 %416 }
 0x122   : > { %v2810_v26 = vpack.c.b8 %v2116_v58, %v2116_v58  ;;  %1306 = vpow2.f32 %v497_v53  ;;  %v742_v39 = vadd.f32 %v708_v1, %v707_v37  ;;  %v710_v13 = vsel %vm2234_vm0, %v1281_v17, 0.0  ;;  %v1291_v58 = vpop.eup %1290  ;;  %v2822_v53 = vld [vmem:[#allocation20_spill] sm:$0xff]  ;;  %v420_v37 = vpop.xlane.xlu1 %419 }
 0x123   : > { %vm2358_vm12 = vcmp.ne.s32.totalorder %v2807_v29, 0  ;;  %v2372_v38 = vsub.f32 %v2813_v49, %v414_v27  ;;  %v2814_v51 = vunpack.c.0.s8 %v2106_v63  ;;  %1308 = vpow2.f32 %v499_v36  ;;  %v1293_v7 = vpop.eup %1292  ;;  %v2826_v49 = vld [vmem:[#allocation21_spill] sm:$0xff] }
 0x124   : > { %vm2365_vm13 = vnez %v2810_v26  ;;  %v745_v54 = vadd.f32 %v710_v13, %v709_v30  ;;  %v2381_v52 = vsub.f32 %v2817_v20, %v414_v27  ;;  %v2384_v24 = vsub.f32 %v2818_v9, %v417_v2  ;;  %743 = vadd.xlane.f32.xlu1 %v742_v39  ;;  %v1295_v1 = vpop.eup %1294 }
 0x125   : > { %vm2376_vm14 = vcmp.ne.s32.totalorder %v2814_v51, 0  ;;  %v2819_v5 = vunpack.c.1.s8 %v2106_v63  ;;  %1310 = vpow2.f32 %v501_v50  ;;  %v505_v28 = vmul.f32 1.442695, %v2372_v38  ;;  %v1297_v26 = vpop.eup %1296  ;;  %v2827_v51 = vld [vmem:[#allocation22_spill] sm:$0xff] }
 0x126   : > { %v2394_v36 = vsub.f32 %v2822_v53, %v417_v2  ;;  %v711_v27 = vsel %vm2249_vm1, %v1283_v15, 0.0  ;;  %v2823_v10 = vunpack.c.0.s8 %v2109_v0  ;;  %1312 = vpow2.f32 %v503_v32  ;;  %746 = vadd.xlane.f32.xlu0 %v745_v54  ;;  %v1299_v13 = vpop.eup %1298 }
 0x127   : > { %vm2388_vm15 = vcmp.ne.s32.totalorder %v2819_v5, 0  ;;  %v507_v50 = vmul.f32 1.442695, %v2381_v52  ;;  %v509_v30 = vmul.f32 1.442695, %v2384_v24  ;;  %v712_v29 = vsel %vm2259_vm2, %v1285_v25, 0.0  ;;  %v1301_v16 = vpop.eup %1300 }
 0x128   : > { %vm2400_vm0 = vcmp.ne.s32.totalorder %v2823_v10, 0  ;;  %1314 = vpow2.f32 %v505_v28  ;;  %v511_v31 = vmul.f32 1.442695, %v2394_v36  ;;  %v748_v15 = vadd.f32 %v712_v29, %v711_v27 }
 0x129   : > { %v713_v39 = vsel %vm2273_vm3, %v1287_v61, 0.0  ;;  %1316 = vpow2.f32 %v507_v50  ;;  %v714_v32 = vsel %vm2284_vm4, %v1289_v43, 0.0  ;;  %v2414_v2 = vsub.f32 %v2826_v49, %v420_v37  ;;  %v1303_v61 = vpop.eup %1302 }
 0x12a   : > { %v2417_v54 = vsub.f32 %v2827_v51, %v420_v37  ;;  %1318 = vpow2.f32 %v509_v30  ;;  %749 = vadd.xlane.f32.xlu1 %v748_v15  ;;  %v751_v25 = vadd.f32 %v714_v32, %v713_v39  ;;  %v715_v20 = vsel %vm2292_vm5, %v1291_v58, 0.0  ;;  %v1305_v5 = vpop.eup %1304 }
 0x12b   : > { %v716_v57 = vsel %vm2298_vm6, %v1293_v7, 0.0  ;;  %1320 = vpow2.f32 %v511_v31  ;;  %v513_v46 = vmul.f32 1.442695, %v2414_v2  ;;  %v717_v28 = vsel %vm2318_vm7, %v1295_v1, 0.0 }
 0x12c   : > { %v515_v43 = vmul.f32 1.442695, %v2417_v54  ;;  %v754_v9 = vadd.f32 %v716_v57, %v715_v20  ;;  %752 = vadd.xlane.f32.xlu0 %v751_v25  ;;  %v718_v53 = vsel %vm2324_vm8, %v1297_v26, 0.0  ;;  %v719_v40 = vsel %vm2330_vm9, %v1299_v13, 0.0  ;;  %v1307_v37 = vpop.eup %1306 }
 0x12d   : > { %v720_v60 = vsel %vm2336_vm10, %v1301_v16, 0.0  ;;  %1322 = vpow2.f32 %v513_v46  ;;  %v757_v58 = vadd.f32 %v718_v53, %v717_v28  ;;  %v721_v7 = vsel %vm2346_vm11, %v1303_v61, 0.0  ;;  %v1309_v55 = vpop.eup %1308 }
 0x12e   : > { %v665_v27 = vunpack.c.0.s8 %v2132_v42  ;;  %1324 = vpow2.f32 %v515_v43  ;;  %755 = vadd.xlane.f32.xlu1 %v754_v9  ;;  %v760_v6 = vadd.f32 %v720_v60, %v719_v40  ;;  %v722_v4 = vsel %vm2358_vm12, %v1305_v5, 0.0  ;;  %v2839_v40 = vld [vmem:[#allocation23_spill] sm:$0xff] }
 0x12f   : > { %v636_v47 = vsel %vm2365_vm13, 16843009, %v2732_v19  ;;  %v723_v10 = vsel %vm2376_vm14, %v1307_v37, 0.0  ;;  %v2828_v3 = vunpack.c.1.s8 %v2109_v0  ;;  %v666_v50 = vunpack.c.1.s8 %v2132_v42  ;;  %v1311_v30 = vpop.eup %1310  ;;  %v2851_v42 = vld [vmem:[#allocation35_spill] sm:$0xff] }
 0x130   : > { %758 = vadd.xlane.f32.xlu0 %v757_v58  ;;  %v763_v21 = vadd.f32 %v722_v4, %v721_v7  ;;  %v724_v29 = vsel %vm2388_vm15, %v1309_v55, 0.0  ;;  %v2831_v19 = vunpack.c.0.s8 %v2114_v11  ;;  %v1313_v62 = vpop.eup %1312  ;;  %v725_v0 = vsel %vm2400_vm0, %v1311_v30, 0.0  ;;  %v2840_v58 = vld [vmem:[#allocation24_spill] sm:$0xff]  ;;  %v2843_v55 = vld [vmem:[#allocation27_spill] sm:$0xff]  ;;  %v2846_v30 = vld [vmem:[#allocation30_spill] sm:$0xff] }
 0x131   : > { %vm2445_vm1 = vcmp.ne.s32.totalorder %v2828_v3, 0  ;;  %v2834_v26 = vunpack.c.1.s8 %v2114_v11  ;;  %v667_v31 = vunpack.c.0.s8 %v636_v47  ;;  %v766_v17 = vadd.f32 %v724_v29, %v723_v10  ;;  %v2844_v3 = vld [vmem:[#allocation28_spill] sm:$0xff]  ;;  %v2847_v29 = vld [vmem:[#allocation31_spill] sm:$0xff] }
 0x132   : > { %vm2454_vm2 = vcmp.ne.s32.totalorder %v2831_v19, 0  ;;  %v1315_v15 = vpop.eup %1314  ;;  %761 = vadd.xlane.f32.xlu1 %v760_v6  ;;  %v726_v39 = vsel %vm2445_vm1, %v1313_v62, 0.0  ;;  %vm2468_vm4 = vcmp.ne.s32.totalorder %v665_v27, 0  ;;  %v668_v32 = vunpack.c.1.s8 %v636_v47  ;;  %v2841_v27 = vld [vmem:[#allocation25_spill] sm:$0xff]  ;;  %v2842_v6 = vld [vmem:[#allocation26_spill] sm:$0xff]  ;;  %v2848_v19 = vld [vmem:[#allocation32_spill] sm:$0xff] }
 0x133   : > { %vm2462_vm3 = vcmp.ne.s32.totalorder %v2834_v26, 0  ;;  %v1317_v63 = vpop.eup %1316  ;;  %v727_v11 = vsel %vm2454_vm2, %v1315_v15, 0.0  ;;  %vm698_vm5 = vcmp.ne.s32.totalorder %v666_v50, 0  ;;  %v769_v51 = vadd.f32 %v726_v39, %v725_v0  ;;  %v2845_v50 = vld [vmem:[#allocation29_spill] sm:$0xff]  ;;  %v2850_v0 = vld [vmem:[#allocation34_spill] sm:$0xff] }
 0x134   : > { %v1319_v49 = vpop.eup %1318  ;;  %764 = vadd.xlane.f32.xlu0 %v763_v21  ;;  %v728_v16 = vsel %vm2462_vm3, %v1317_v63, 0.0  ;;  %vm699_vm6 = vcmp.ne.s32.totalorder %v667_v31, 0  ;;  %vm700_vm7 = vcmp.ne.s32.totalorder %v668_v32, 0  ;;  %v857_v60 = vmul.f32 %v2184_v41, %v2839_v40  ;;  %v2849_v62 = vld [vmem:[#allocation33_spill] sm:$0xff]  ;;  %v2852_v31 = vld [vmem:[#allocation36_spill] sm:$0xff]  ;;  %v2854_v39 = vld [vmem:[#allocation38_spill] sm:$0xff] }
 0x135   : > { %v1321_v25 = vpop.eup %1320  ;;  %v729_v20 = vsel %vm2468_vm4, %v1319_v49, 0.0  ;;  %v772_v57 = vadd.f32 %v728_v16, %v727_v11  ;;  %v858_v7 = vmul.f32 %v2187_v59, %v2840_v58  ;;  %v859_v37 = vmul.f32 %v2197_v48, %v2841_v27  ;;  %v2855_v32 = vld [vmem:[#allocation39_spill] sm:$0xff]  ;;  %v2856_v63 = vld [vmem:[#allocation40_spill] sm:$0xff]  ;;  %v2857_v49 = vld [vmem:[#allocation41_spill] sm:$0xff] }
 0x136   : > { %767 = vadd.xlane.f32.xlu1 %v766_v17  ;;  %v730_v61 = vsel %vm698_vm5, %v1321_v25, 0.0  ;;  %v860_v4 = vmul.f32 %v2200_v33, %v2842_v6  ;;  %v861_v10 = vmul.f32 %v2226_v18, %v2843_v55  ;;  %v862_v1 = vmul.f32 %v2229_v35, %v2844_v3  ;;  %v2853_v17 = vld [vmem:[#allocation37_spill] sm:$0xff]  ;;  %v799_v25 = vpop.xlane.xlu0 %798 }
 0x137   : > { %v1323_v46 = vpop.eup %1322  ;;  %v775_v9 = vadd.f32 %v730_v61, %v729_v20  ;;  %v895_v47 = vadd.f32 %v858_v7, %v857_v60  ;;  %v863_v59 = vmul.f32 %v2243_v45, %v2845_v50  ;;  %v864_v21 = vmul.f32 %v2254_v23, %v2846_v30  ;;  %v2518_v20 = vpop.xlane.xlu1 %801 }
 0x138   : > { %v1325_v43 = vpop.eup %1324  ;;  %770 = vadd.xlane.f32.xlu0 %v769_v51  ;;  %v731_v5 = vsel %vm699_vm6, %v1323_v46, 0.0  ;;  %v898_v41 = vadd.f32 %v860_v4, %v859_v37  ;;  %v901_v48 = vadd.f32 %v862_v1, %v861_v10  ;;  %v865_v33 = vmul.f32 %v2264_v8, %v2847_v29  ;;  %v2858_v51 = vld [vmem:[#allocation42_spill] sm:$0xff] }
 0x139   : > { %v732_v28 = vsel %vm700_vm7, %v1325_v43, 0.0  ;;  %v866_v14 = vmul.f32 %v2267_v34, %v2848_v19  ;;  %v904_v18 = vadd.f32 %v864_v21, %v863_v59  ;;  %v867_v35 = vmul.f32 %v2305_v44, %v2849_v62 }
 0x13a   : > { %773 = vadd.xlane.f32.xlu1 %v772_v57  ;;  %v778_v53 = vadd.f32 %v732_v28, %v731_v5  ;;  %v868_v26 = vmul.f32 %v2308_v56, %v2850_v0  ;;  %v869_v23 = vmul.f32 %v2311_v12, %v2851_v42  ;;  %v870_v15 = vmul.f32 %v2314_v22, %v2852_v31 }
 0x13b   : > { %v907_v45 = vadd.f32 %v866_v14, %v865_v33  ;;  %v871_v34 = vmul.f32 %v2372_v38, %v2853_v17  ;;  %v872_v13 = vmul.f32 %v2381_v52, %v2854_v39  ;;  %v873_v56 = vmul.f32 %v2384_v24, %v2855_v32  ;;  %v2520_v24 = vpop.xlane.xlu0 %804  ;;  %v2522_v57 = vpop.xlane.xlu1 %807 }
 0x13c   : > { %776 = vadd.xlane.f32.xlu0 %v775_v9  ;;  %v910_v8 = vadd.f32 %v868_v26, %v867_v35  ;;  %v913_v44 = vadd.f32 %v870_v15, %v869_v23  ;;  %v874_v11 = vmul.f32 %v2394_v36, %v2856_v63  ;;  %v875_v22 = vmul.f32 %v2414_v2, %v2857_v49 }
 0x13d   : > { %v916_v12 = vadd.f32 %v872_v13, %v871_v34  ;;  %v876_v16 = vmul.f32 %v2417_v54, %v2858_v51  ;;  %v989_v1 = vadd.f32 1e-06, %v799_v25  ;;  %v990_v50 = vadd.f32 1e-06, %v2518_v20 }
 0x13e   : > { %779 = vadd.xlane.f32.xlu1 %v778_v53  ;;  %v919_v38 = vadd.f32 %v874_v11, %v873_v56  ;;  %v991_v29 = vadd.f32 1e-06, %v2520_v24  ;;  %v992_v19 = vadd.f32 1e-06, %v2522_v57  ;;  %vm1053_vm8 = vcmask 7168  }
 0x13f   : > { %v922_v52 = vadd.f32 %v876_v16, %v875_v22  ;;  %v2524_v36 = vpop.xlane.xlu0 %810  ;;  %v2526_v61 = vpop.xlane.xlu1 %813 }
 0x140   : > { %896 = vadd.xlane.f32.xlu0 %v895_v47  ;;  %v993_v35 = vadd.f32 1e-06, %v2524_v36  ;;  %v994_v23 = vadd.f32 1e-06, %v2526_v61 }
 0x142   : > { %899 = vadd.xlane.f32.xlu1 %v898_v41 }
 0x143   : > { %v2528_v2 = vpop.xlane.xlu0 %816  ;;  %v2530_v46 = vpop.xlane.xlu1 %819 }
 0x144   : > { %902 = vadd.xlane.f32.xlu0 %v901_v48 }
 0x146   : > { %905 = vadd.xlane.f32.xlu1 %v904_v18 }
 0x147   : > { %v2532_v54 = vpop.xlane.xlu0 %822  ;;  %v2534_v43 = vpop.xlane.xlu1 %825 }
 0x148   : > { %908 = vadd.xlane.f32.xlu0 %v907_v45 }
 0x14a   : > { %911 = vadd.xlane.f32.xlu1 %v910_v8 }
 0x14b   : > { %v2536_v9 = vpop.xlane.xlu0 %828  ;;  %v2538_v5 = vpop.xlane.xlu1 %831 }
 0x14c   : > { %914 = vadd.xlane.f32.xlu0 %v913_v44 }
 0x14e   : > { %917 = vadd.xlane.f32.xlu1 %v916_v12  ;;  %v995_v12 = vadd.f32 1e-06, %v2528_v2 }
 0x14f   : > { %v2540_v28 = vpop.xlane.xlu0 %834  ;;  %v2542_v53 = vpop.xlane.xlu1 %837 }
 0x150   : > { %920 = vadd.xlane.f32.xlu0 %v919_v38 }
 0x152   : > { %923 = vadd.xlane.f32.xlu1 %v922_v52 }
 0x153   : > { %v2544_v40 = vpop.xlane.xlu0 %840  ;;  %v2546_v60 = vpop.xlane.xlu1 %843 }
 0x192   : > { %v879_v58 = vpop.xlane.xlu0 %878 }
 0x196   : > { %v2550_v27 = vpop.xlane.xlu0 %884 }
 0x198   : > { %v2548_v7 = vpop.xlane.xlu1 %881 }
 0x19c   : > { %v2552_v37 = vpop.xlane.xlu1 %887 }
 0x19e   : > { %v2554_v6 = vpop.xlane.xlu0 %890 }
 0x1a3   : > { %v2556_v4 = vpop.xlane.xlu1 %893 }
 0x1a4   : > { %v735_v47 = vpop.xlane.xlu0 %734 }
 0x1a5   : > { %v781_v55 = vadd.f32 1e-12, %v735_v47 }
 0x1a7   : > { %1326 = vlog2.f32 %v781_v55 }
 0x1a9   : > { %v738_v10 = vpop.xlane.xlu1 %737 }
 0x1aa   : > { %v782_v3 = vadd.f32 1e-12, %v738_v10 }
 0x1ab   : > { %v741_v41 = vpop.xlane.xlu0 %740 }
 0x1ac   : > { %1328 = vlog2.f32 %v782_v3  ;;  %v783_v59 = vadd.f32 1e-12, %v741_v41  ;;  %v996_v41 = vadd.f32 1e-06, %v2530_v46 }
 0x1ae   : > { %1330 = vlog2.f32 %v783_v59 }
 0x1af   : > { %1332 = vrcp.f32 %v989_v1 }
 0x1b0   : > { %1334 = vrcp.f32 %v990_v50 }
 0x1b1   : > { %v744_v30 = vpop.xlane.xlu1 %743  ;;  %v1327_v18 = vpop.eup %1326 }
 0x1b2   : > { %v784_v21 = vadd.f32 1e-12, %v744_v30  ;;  %v926_v0 = vmul.f32 0.6931472, %v1327_v18 }
 0x1b3   : > { %v747_v48 = vpop.xlane.xlu0 %746 }
 0x1b4   : > { %v785_v33 = vadd.f32 1e-12, %v747_v48  ;;  %1336 = vlog2.f32 %v784_v21  ;;  %v957_v31 = vmul.f32 %v926_v0, %v799_v25 }
 0x1b6   : > { %1338 = vlog2.f32 %v785_v33  ;;  %v1329_v42 = vpop.eup %1328  ;;  %v973_v39 = vsub.f32 %v879_v58, %v957_v31  ;;  %v997_v33 = vadd.f32 1e-06, %v2532_v54 }
 0x1b7   : > { %v750_v14 = vpop.xlane.xlu1 %749  ;;  %1340 = vrcp.f32 %v991_v29  ;;  %v928_v8 = vmul.f32 0.6931472, %v1329_v42 }
 0x1b8   : > { %v786_v62 = vadd.f32 1e-12, %v750_v14  ;;  %v1331_v34 = vpop.eup %1330 }
 0x1b9   : > { %v753_v26 = vpop.xlane.xlu0 %752  ;;  %v1333_v44 = vpop.eup %1332  ;;  %v958_v32 = vmul.f32 %v928_v8, %v2518_v20  ;;  %v930_v56 = vmul.f32 0.6931472, %v1331_v34 }
 0x1ba   : > { %1342 = vlog2.f32 %v786_v62  ;;  %v787_v45 = vadd.f32 1e-12, %v753_v26  ;;  %v1335_v11 = vpop.eup %1334  ;;  %v1006_v49 = vmul.f32 %v1333_v44, %v973_v39 }
 0x1bb   : > { %1344 = vrcp.f32 %v992_v19  ;;  %v756_v15 = vpop.xlane.xlu1 %755  ;;  %v974_v16 = vsub.f32 %v2548_v7, %v958_v32  ;;  %v959_v38 = vmul.f32 %v930_v56, %v2520_v24 }
 0x1bc   : > { %1346 = vlog2.f32 %v787_v45  ;;  %v788_v17 = vadd.f32 1e-12, %v756_v15  ;;  %v1037_v20 = vsub.f32 0.0, %v1006_v49 }
 0x1bd   : > { %1348 = vrcp.f32 %v993_v35  ;;  %v759_v13 = vpop.xlane.xlu0 %758  ;;  %v1008_v55 = vmul.f32 %v1335_v11, %v974_v16  ;;  %v975_v10 = vsub.f32 %v2550_v27, %v959_v38  ;;  %v1001_v38 = vadd.f32 1e-06, %v2540_v28 }
 0x1be   : > { %1350 = vlog2.f32 %v788_v17  ;;  %v789_v63 = vadd.f32 1e-12, %v759_v13  ;;  %v1337_v51 = vpop.eup %1336  ;;  %1054 = vst.msk [vmem:[%s2572_s9] sm:$0xff] %vm1053_vm8, %v1037_v20 }
 0x1bf   : > { %1352 = vrcp.f32 %v994_v23  ;;  %v762_v22 = vpop.xlane.xlu1 %761  ;;  %v932_v58 = vmul.f32 0.6931472, %v1337_v51  ;;  %v1038_v30 = vsub.f32 0.0, %v1008_v55 }
 0x1c0   : > { %1354 = vlog2.f32 %v789_v63  ;;  %v790_v52 = vadd.f32 1e-12, %v762_v22  ;;  %v1339_v25 = vpop.eup %1338  ;;  %v1000_v63 = vadd.f32 1e-06, %v2538_v5 }
 0x1c1   : > { %v765_v47 = vpop.xlane.xlu0 %764  ;;  %v934_v3 = vmul.f32 0.6931472, %v1339_v25  ;;  %v1341_v1 = vpop.eup %1340  ;;  %v960_v24 = vmul.f32 %v932_v58, %v2522_v57  ;;  %1055 = vst.msk [vmem:[%s2572_s9 + $0x8] sm:$0xff] %vm1053_vm8, %v1038_v30 }
 0x1c2   : > { %1356 = vlog2.f32 %v790_v52  ;;  %v791_v7 = vadd.f32 1e-12, %v765_v47  ;;  %v1010_v21 = vmul.f32 %v1341_v1, %v975_v10  ;;  %v1002_v10 = vadd.f32 1e-06, %v2542_v53 }
 0x1c3   : > { %1358 = vrcp.f32 %v995_v12  ;;  %v768_v50 = vpop.xlane.xlu1 %767  ;;  %v961_v48 = vmul.f32 %v934_v3, %v2524_v36  ;;  %v976_v19 = vsub.f32 %v2552_v37, %v960_v24  ;;  %v998_v36 = vadd.f32 1e-06, %v2534_v43 }
 0x1c4   : > { %v1343_v59 = vpop.eup %1342  ;;  %v792_v29 = vadd.f32 1e-12, %v768_v50  ;;  %1360 = vlog2.f32 %v791_v7  ;;  %v1039_v57 = vsub.f32 0.0, %v1010_v21 }
 0x1c5   : > { %v1345_v27 = vpop.eup %1344  ;;  %v936_v14 = vmul.f32 0.6931472, %v1343_v59  ;;  %v771_v18 = vpop.xlane.xlu0 %770  ;;  %v977_v35 = vsub.f32 %v2554_v6, %v961_v48  ;;  %v999_v6 = vadd.f32 1e-06, %v2536_v9  ;;  %v1003_v59 = vadd.f32 1e-06, %v2544_v40 }
 0x1c6   : > { %v1347_v62 = vpop.eup %1346  ;;  %1362 = vlog2.f32 %v792_v29  ;;  %v793_v0 = vadd.f32 1e-12, %v771_v18  ;;  %v1012_v45 = vmul.f32 %v1345_v27, %v976_v19  ;;  %1056 = vst.msk [vmem:[%s2572_s9 + $0x10] sm:$0xff] %vm1053_vm8, %v1039_v57 }
 0x1c7   : > { %v1349_v26 = vpop.eup %1348  ;;  %1364 = vrcp.f32 %v996_v41  ;;  %v962_v42 = vmul.f32 %v936_v14, %v2526_v61  ;;  %v774_v37 = vpop.xlane.xlu1 %773  ;;  %v938_v15 = vmul.f32 0.6931472, %v1347_v62  ;;  %v1004_v14 = vadd.f32 1e-06, %v2546_v60 }
 0x1c8   : > { %v1351_v23 = vpop.eup %1350  ;;  %v1014_v31 = vmul.f32 %v1349_v26, %v977_v35  ;;  %1366 = vlog2.f32 %v793_v0  ;;  %v794_v8 = vadd.f32 1e-12, %v774_v37  ;;  %v1040_v34 = vsub.f32 0.0, %v1012_v45 }
 0x1c9   : > { %v1353_v17 = vpop.eup %1352  ;;  %1368 = vrcp.f32 %v997_v33  ;;  %v978_v39 = vsub.f32 %v2556_v4, %v962_v42  ;;  %v777_v13 = vpop.xlane.xlu0 %776  ;;  %v940_v32 = vmul.f32 0.6931472, %v1351_v23  ;;  %v963_v51 = vmul.f32 %v938_v15, %v2528_v2 }
 0x1ca   : > { %v1355_v44 = vpop.eup %1354  ;;  %v1041_v61 = vsub.f32 0.0, %v1014_v31  ;;  %1370 = vlog2.f32 %v794_v8  ;;  %v795_v56 = vadd.f32 1e-12, %v777_v13  ;;  %1057 = vst.msk [vmem:[%s2572_s9 + $0x18] sm:$0xff] %vm1053_vm8, %v1040_v34 }
 0x1cb   : > { %1372 = vrcp.f32 %v998_v36  ;;  %v1016_v11 = vmul.f32 %v1353_v17, %v978_v39  ;;  %v780_v12 = vpop.xlane.xlu1 %779  ;;  %v942_v22 = vmul.f32 0.6931472, %v1355_v44  ;;  %v964_v47 = vmul.f32 %v940_v32, %v2530_v46 }
 0x1cc   : > { %v1357_v49 = vpop.eup %1356  ;;  %1058 = vst.msk [vmem:[%s2572_s9 + $0x20] sm:$0xff] %vm1053_vm8, %v1041_v61  ;;  %1374 = vlog2.f32 %v795_v56  ;;  %v796_v4 = vadd.f32 1e-12, %v780_v12 }
 0x1cd   : > { %v1359_v16 = vpop.eup %1358  ;;  %1376 = vrcp.f32 %v999_v6  ;;  %v1042_v52 = vsub.f32 0.0, %v1016_v11  ;;  %v944_v25 = vmul.f32 0.6931472, %v1357_v49  ;;  %v897_v20 = vpop.xlane.xlu0 %896  ;;  %v965_v7 = vmul.f32 %v942_v22, %v2532_v54 }
 0x1ce   : > { %1378 = vlog2.f32 %v796_v4  ;;  %v979_v58 = vsub.f32 %v897_v20, %v963_v51  ;;  %v1361_v55 = vpop.eup %1360 }
 0x1cf   : > { %1380 = vrcp.f32 %v1000_v63  ;;  %1059 = vst.msk [vmem:[%s2572_s9 + $0x28] sm:$0xff] %vm1053_vm8, %v1042_v52  ;;  %v900_v3 = vpop.xlane.xlu1 %899  ;;  %v946_v2 = vmul.f32 0.6931472, %v1361_v55  ;;  %v966_v46 = vmul.f32 %v944_v25, %v2534_v43 }
 0x1d0   : > { %v1363_v1 = vpop.eup %1362  ;;  %v1018_v41 = vmul.f32 %v1359_v16, %v979_v58  ;;  %v980_v24 = vsub.f32 %v900_v3, %v964_v47  ;;  %1382 = vrcp.f32 %v1001_v38 }
 0x1d1   : > { %v1365_v50 = vpop.eup %1364  ;;  %v903_v30 = vpop.xlane.xlu0 %902  ;;  %v948_v48 = vmul.f32 0.6931472, %v1363_v1  ;;  %1384 = vrcp.f32 %v1002_v10  ;;  %v967_v43 = vmul.f32 %v946_v2, %v2536_v9 }
 0x1d2   : > { %v1367_v21 = vpop.eup %1366  ;;  %v1043_v29 = vsub.f32 0.0, %v1018_v41  ;;  %v1020_v27 = vmul.f32 %v1365_v50, %v980_v24  ;;  %v981_v33 = vsub.f32 %v903_v30, %v965_v7  ;;  %1386 = vrcp.f32 %v1003_v59 }
 0x1d3   : > { %v1369_v19 = vpop.eup %1368  ;;  %v950_v18 = vmul.f32 0.6931472, %v1367_v21  ;;  %v906_v54 = vpop.xlane.xlu1 %905  ;;  %v968_v15 = vmul.f32 %v948_v48, %v2538_v5  ;;  %1388 = vrcp.f32 %v1004_v14 }
 0x1d4   : > { %v1371_v62 = vpop.eup %1370  ;;  %1060 = vst.msk [vmem:[%s2572_s9 + $0x30] sm:$0xff] %vm1053_vm8, %v1043_v29  ;;  %v1044_v57 = vsub.f32 0.0, %v1020_v27  ;;  %v1022_v35 = vmul.f32 %v1369_v19, %v981_v33  ;;  %v982_v0 = vsub.f32 %v906_v54, %v966_v46 }
 0x1d5   : > { %v1373_v26 = vpop.eup %1372  ;;  %v952_v36 = vmul.f32 0.6931472, %v1371_v62  ;;  %v909_v45 = vpop.xlane.xlu0 %908  ;;  %v969_v6 = vmul.f32 %v950_v18, %v2540_v28 }
 0x1d6   : > { %v1375_v42 = vpop.eup %1374  ;;  %1061 = vst.msk [vmem:[%s2572_s9 + $0x38] sm:$0xff] %vm1053_vm8, %v1044_v57  ;;  %v1045_v37 = vsub.f32 0.0, %v1022_v35  ;;  %v1024_v23 = vmul.f32 %v1373_v26, %v982_v0  ;;  %v983_v31 = vsub.f32 %v909_v45, %v967_v43 }
 0x1d7   : > { %v1377_v8 = vpop.eup %1376  ;;  %v912_v17 = vpop.xlane.xlu1 %911  ;;  %v954_v34 = vmul.f32 0.6931472, %v1375_v42  ;;  %v970_v56 = vmul.f32 %v952_v36, %v2542_v53 }
 0x1d8   : > { %v1379_v9 = vpop.eup %1378  ;;  %1062 = vst.msk [vmem:[%s2572_s9 + $0x40] sm:$0xff] %vm1053_vm8, %v1045_v37  ;;  %v1046_v39 = vsub.f32 0.0, %v1024_v23  ;;  %v1026_v13 = vmul.f32 %v1377_v8, %v983_v31  ;;  %v984_v44 = vsub.f32 %v912_v17, %v968_v15 }
 0x1d9   : > { %v1381_v61 = vpop.eup %1380  ;;  %v915_v32 = vpop.xlane.xlu0 %914  ;;  %v956_v63 = vmul.f32 0.6931472, %v1379_v9  ;;  %v971_v16 = vmul.f32 %v954_v34, %v2544_v40 }
 0x1da   : > { %1063 = vst.msk [vmem:[%s2572_s9 + $0x48] sm:$0xff] %vm1053_vm8, %v1046_v39  ;;  %v1047_v5 = vsub.f32 0.0, %v1026_v13  ;;  %v1028_v11 = vmul.f32 %v1381_v61, %v984_v44  ;;  %v985_v12 = vsub.f32 %v915_v32, %v969_v6  ;;  %v1383_v28 = vpop.eup %1382 }
 0x1db   : > { %v918_v49 = vpop.xlane.xlu1 %917  ;;  %v1385_v38 = vpop.eup %1384  ;;  %v972_v58 = vmul.f32 %v956_v63, %v2546_v60 }
 0x1dc   : > { %1064 = vst.msk [vmem:[%s2572_s9 + $0x50] sm:$0xff] %vm1053_vm8, %v1047_v5  ;;  %v1048_v22 = vsub.f32 0.0, %v1028_v11  ;;  %v1030_v4 = vmul.f32 %v1383_v28, %v985_v12  ;;  %v986_v51 = vsub.f32 %v918_v49, %v970_v56  ;;  %v1387_v47 = vpop.eup %1386 }
 0x1dd   : > { %v921_v52 = vpop.xlane.xlu0 %920  ;;  %v1389_v2 = vpop.eup %1388 }
 0x1de   : > { %1065 = vst.msk [vmem:[%s2572_s9 + $0x58] sm:$0xff] %vm1053_vm8, %v1048_v22  ;;  %v1049_v53 = vsub.f32 0.0, %v1030_v4  ;;  %v1032_v25 = vmul.f32 %v1385_v38, %v986_v51  ;;  %v987_v20 = vsub.f32 %v921_v52, %v971_v16 }
 0x1df   : > { %v924_v55 = vpop.xlane.xlu1 %923 }
 0x1e0   : > { %1066 = vst.msk [vmem:[%s2572_s9 + $0x60] sm:$0xff] %vm1053_vm8, %v1049_v53  ;;  %v1050_v10 = vsub.f32 0.0, %v1032_v25  ;;  %v1034_v3 = vmul.f32 %v1387_v47, %v987_v20  ;;  %v988_v1 = vsub.f32 %v924_v55, %v972_v58 }
 0x1e2   : > { %1067 = vst.msk [vmem:[%s2572_s9 + $0x68] sm:$0xff] %vm1053_vm8, %v1050_v10  ;;  %v1051_v40 = vsub.f32 0.0, %v1034_v3  ;;  %v1036_v41 = vmul.f32 %v1389_v2, %v988_v1 }
 0x1e4   : > { %1068 = vst.msk [vmem:[%s2572_s9 + $0x70] sm:$0xff] %vm1053_vm8, %v1051_v40  ;;  %v1052_v24 = vsub.f32 0.0, %v1036_v41 }
 0x1e6   : > { %1069 = vst.msk [vmem:[%s2572_s9 + $0x78] sm:$0xff] %vm1053_vm8, %v1052_v24 }
 0x1e7 PF: > { %p16_p2 = scmp.ge.s32.totalorder %s1568_s17, 4   ;;  %s2859_s12 = smov %s1510_s13 }
 0x1e8   : > { %s2860_s13 = smov %s1514_s14  ;;  %s2861_s14 = smov %s1578_s20 }
 0x1e9   : > { %s2862_s15 = smov %s1568_s17  ;;  %18 = sbr.rel (!%p16_p2) target bundleno = 5 (0x5), region = 96 }
 0x1f0   :  { %1092 = vsyncpa [#allocation3], 1 }
 0x1f1   :  { %1094 = vsyncpa [#allocation3 + $0x1], 1 }
 0x1f2   :  { %1095 = vsyncpa [#allocation5], 1 }
 0x1f3   :  { %1097 = vsyncpa [#allocation5 + $0x1], 1 }

</bundles_post_ra>
